<compile_context>
chip_gen: v7x
topology: tpu7x:2x2x1
jax: 0.10.0
libtpu: 0.0.40
codegen_flags: <defaults>
</compile_context>

<pallas_src>
import functools

import jax
import jax.numpy as jnp
from jax.experimental import pallas as pl
from jax.experimental.pallas import tpu as pltpu


def _decoder_kernel(ids_ref, emb_hbm, h_ref, c_ref, wg_ref, bg_ref, wo_ref, bo_ref,
                    logp_ref, h_out_ref, c_out_ref,
                    x_vmem, dma_sem, *, hidden_size, batch_size):
    H = hidden_size
    B = batch_size

    # ---- In-kernel embedding gather: DMA the B selected rows HBM -> VMEM. ----
    copies = []
    for b in range(B):                                   # B is small & static
        cp = pltpu.make_async_copy(
            emb_hbm.at[pl.ds(ids_ref[b], 1)],            # (1, H) row in HBM
            x_vmem.at[pl.ds(b, 1)],                      # (1, H) row in VMEM
            dma_sem.at[b],
        )
        cp.start()
        copies.append(cp)
    for cp in copies:
        cp.wait()

    # F.relu on the embedded input (applied before the LSTM step), in f32.
    x = jnp.maximum(x_vmem[...], 0.0)
    h = h_ref[...]
    c = c_ref[...]

    # Fused LSTM gates: [x, h] (B, 2H) @ W_gates (2H, 4H)  (bf16 operands, f32 acc)
    xh = jnp.concatenate([x, h], axis=-1).astype(jnp.bfloat16)
    gates = (jnp.dot(xh, wg_ref[...], preferred_element_type=jnp.float32)
             + bg_ref[...])

    # PyTorch gate ordering: input, forget, cell(g), output. All math in f32.
    i_g = jax.nn.sigmoid(gates[:, 0 * H:1 * H])
    f_g = jax.nn.sigmoid(gates[:, 1 * H:2 * H])
    g_g = jnp.tanh(gates[:, 2 * H:3 * H])
    o_g = jax.nn.sigmoid(gates[:, 3 * H:4 * H])

    c_new = f_g * c + i_g * g_g
    h_new = o_g * jnp.tanh(c_new)

    h_out_ref[...] = h_new
    c_out_ref[...] = c_new

    # Output projection + LogSoftmax over the vocab dim (dim=-1 for 2-D input,
    # matching nn.LogSoftmax()'s legacy implicit-dim behavior here).
    logits = (jnp.dot(h_new.astype(jnp.bfloat16), wo_ref[...],
                      preferred_element_type=jnp.float32)
              + bo_ref[...])
    m = jnp.max(logits, axis=-1, keepdims=True)
    s = logits - m
    lse = jnp.log(jnp.sum(jnp.exp(s), axis=-1, keepdims=True))
    logp_ref[...] = s - lse


def prepare_params(raw):
    """One-time conversion of PyTorch-layout params into the kernel layout."""
    return {
        "embedding": raw["embedding"].astype(jnp.float32),                    # (V, H), stays in HBM
        "w_gates": jnp.concatenate([raw["w_ih"].T, raw["w_hh"].T],
                                   axis=0).astype(jnp.bfloat16),              # (2H, 4H)
        "b_gates": (raw["b_ih"] + raw["b_hh"]).reshape(1, -1).astype(jnp.float32),  # (1, 4H)
        "w_out": raw["w_out"].T.astype(jnp.bfloat16),                         # (H, V)
        "b_out": raw["b_out"].reshape(1, -1).astype(jnp.float32),             # (1, V)
    }


def decoder_forward(prep, input_ids, hidden):
    """Pallas equivalent of Decoder_ShowAndTellModel.forward.

    input_ids: int32 (B,)
    hidden   : tuple (h0, c0), each float32 (1, B, H)   [num_layers = 1]
    returns  : (log_probs (B, V), (h1 (1,B,H), c1 (1,B,H)))
    """
    h0, c0 = hidden
    emb = prep["embedding"]
    V, H = emb.shape
    B = input_ids.shape[0]

    kernel = functools.partial(_decoder_kernel, hidden_size=H, batch_size=B)
    logp, h1, c1 = pl.pallas_call(
        kernel,
        out_shape=(
            jax.ShapeDtypeStruct((B, V), jnp.float32),
            jax.ShapeDtypeStruct((B, H), jnp.float32),
            jax.ShapeDtypeStruct((B, H), jnp.float32),
        ),
        in_specs=[
            pl.BlockSpec(memory_space=pltpu.MemorySpace.SMEM),   # input_ids
            pl.BlockSpec(memory_space=pl.ANY),                   # embedding table (HBM)
            pl.BlockSpec(memory_space=pltpu.MemorySpace.VMEM),   # h0
            pl.BlockSpec(memory_space=pltpu.MemorySpace.VMEM),   # c0
            pl.BlockSpec(memory_space=pltpu.MemorySpace.VMEM),   # w_gates (bf16)
            pl.BlockSpec(memory_space=pltpu.MemorySpace.VMEM),   # b_gates
            pl.BlockSpec(memory_space=pltpu.MemorySpace.VMEM),   # w_out (bf16)
            pl.BlockSpec(memory_space=pltpu.MemorySpace.VMEM),   # b_out
        ],
        out_specs=(pl.BlockSpec(memory_space=pltpu.MemorySpace.VMEM),) * 3,
        scratch_shapes=[
            pltpu.VMEM((B, H), jnp.float32),       # gathered + ReLU'd embeddings
            pltpu.SemaphoreType.DMA((B,)),
        ],
        # Recurrent state updated in place: h0 -> h1 buffer, c0 -> c1 buffer.
        input_output_aliases={2: 1, 3: 2},
    )(input_ids, emb, h0[0], c0[0],
      prep["w_gates"], prep["b_gates"], prep["w_out"], prep["b_out"])

    return logp, (h1[None], c1[None])


def reference_forward(prep, input_ids, hidden):
    """Pure-JAX reference with the same (bf16-weight) numerics for validation."""
    h0, c0 = hidden
    h, c = h0[0], c0[0]
    H = h.shape[-1]
    x = jnp.maximum(jnp.take(prep["embedding"], input_ids, axis=0), 0.0)
    xh = jnp.concatenate([x, h], axis=-1).astype(jnp.bfloat16).astype(jnp.float32)
    gates = xh @ prep["w_gates"].astype(jnp.float32) + prep["b_gates"]
    i_g = jax.nn.sigmoid(gates[:, 0 * H:1 * H])
    f_g = jax.nn.sigmoid(gates[:, 1 * H:2 * H])
    g_g = jnp.tanh(gates[:, 2 * H:3 * H])
    o_g = jax.nn.sigmoid(gates[:, 3 * H:4 * H])
    c_new = f_g * c + i_g * g_g
    h_new = o_g * jnp.tanh(c_new)
    logits = (h_new.astype(jnp.bfloat16).astype(jnp.float32)
              @ prep["w_out"].astype(jnp.float32) + prep["b_out"])
    logp = jax.nn.log_softmax(logits, axis=-1)
    return logp, (h_new[None], c_new[None])


def init_params(key, hidden_size, output_size):
    """PyTorch-layout parameters (as nn.Embedding / nn.LSTM / nn.Linear hold them)."""
    ks = jax.random.split(key, 7)
    scale = 0.1
    return {
        "embedding": scale * jax.random.normal(ks[0], (output_size, hidden_size), jnp.float32),
        "w_ih": scale * jax.random.normal(ks[1], (4 * hidden_size, hidden_size), jnp.float32),
        "w_hh": scale * jax.random.normal(ks[2], (4 * hidden_size, hidden_size), jnp.float32),
        "b_ih": scale * jax.random.normal(ks[3], (4 * hidden_size,), jnp.float32),
        "b_hh": scale * jax.random.normal(ks[4], (4 * hidden_size,), jnp.float32),
        "w_out": scale * jax.random.normal(ks[5], (output_size, hidden_size), jnp.float32),
        "b_out": scale * jax.random.normal(ks[6], (output_size,), jnp.float32),
    }


if __name__ == "__main__":
    hidden_size = 128     # rnn_hidden_size
    output_size = 256     # vocab size (rnn_output_size)
    batch = 8
    num_layers = 1        # default; LSTM dropout has no effect with 1 layer

    key = jax.random.PRNGKey(0)
    pkey, ikey = jax.random.split(key)
    raw_params = init_params(pkey, hidden_size, output_size)
    prep = prepare_params(raw_params)          # one-time layout/dtype prep

    input_ids = jax.random.randint(ikey, (batch,), 0, output_size, dtype=jnp.int32)
    # initHidden(batch): zeros of shape (num_layers, B, H)
    h0 = jnp.zeros((num_layers, batch, hidden_size), jnp.float32)
    c0 = jnp.zeros((num_layers, batch, hidden_size), jnp.float32)

    log_probs, (h1, c1) = decoder_forward(prep, input_ids, (h0, c0))
    jax.block_until_ready((log_probs, h1, c1))

    assert log_probs.shape == (batch, output_size)
    assert h1.shape == (1, batch, hidden_size) and c1.shape == (1, batch, hidden_size)
    # log_softmax rows must (approximately) sum to 1 in prob space
    assert jnp.allclose(jnp.sum(jnp.exp(log_probs), axis=-1), 1.0, atol=1e-3)

    # Numerical check against a pure-JAX reference with matching precision.
    ref_logp, (ref_h1, ref_c1) = reference_forward(prep, input_ids, (h0, c0))
    assert jnp.allclose(log_probs, ref_logp, atol=2e-2), "log-prob mismatch"
    assert jnp.allclose(h1, ref_h1, atol=2e-2) and jnp.allclose(c1, ref_c1, atol=2e-2)

    print("KERNEL_OK")
</pallas_src>

<mosaic_0001>
module attributes {stable_mosaic.version = 11 : i64} {
  func.func @_decoder_kernel(%arg0: memref<8xi32, #tpu.memory_space<smem>>, %arg1: memref<256x128xf32, #tpu.memory_space<any>>, %arg2: memref<8x128xf32, #tpu.memory_space<vmem>>, %arg3: memref<8x128xf32, #tpu.memory_space<vmem>>, %arg4: memref<256x512xbf16, #tpu.memory_space<vmem>>, %arg5: memref<1x512xf32, #tpu.memory_space<vmem>>, %arg6: memref<128x256xbf16, #tpu.memory_space<vmem>>, %arg7: memref<1x256xf32, #tpu.memory_space<vmem>>, %arg8: memref<8x256xf32, #tpu.memory_space<vmem>>, %arg9: memref<8x128xf32, #tpu.memory_space<vmem>>, %arg10: memref<8x128xf32, #tpu.memory_space<vmem>>, %arg11: memref<8x128xf32, #tpu.memory_space<vmem>>, %arg12: memref<8x!tpu.dma_semaphore, #tpu.memory_space<semaphore_mem>>) attributes {dimension_semantics = [], scalar_prefetch = 0 : i64, scratch_operands = 2 : i64, tpu.core_type = #tpu.core_type<tc>} {
    %c0 = arith.constant 0 : index
    %0 = memref.load %arg0[%c0] : memref<8xi32, #tpu.memory_space<smem>>
    %c0_i32 = arith.constant 0 : i32
    %c0_i32_0 = arith.constant 0 : i32
    %1 = tpu.memref_slice %arg1[%0, %c0_i32_0] : memref<256x128xf32, #tpu.memory_space<any>> -> memref<1x128xf32, #tpu.memory_space<any>>
    %c0_i32_1 = arith.constant 0 : i32
    %c0_i32_2 = arith.constant 0 : i32
    %2 = tpu.memref_slice %arg11[%c0_i32_1, %c0_i32_2] : memref<8x128xf32, #tpu.memory_space<vmem>> -> memref<1x128xf32, #tpu.memory_space<vmem>>
    %3 = tpu.memref_slice %arg12[%c0_i32] : memref<8x!tpu.dma_semaphore, #tpu.memory_space<semaphore_mem>> -> memref<1x!tpu.dma_semaphore, #tpu.memory_space<semaphore_mem>>
    %4 = tpu.memref_squeeze %3 : memref<1x!tpu.dma_semaphore, #tpu.memory_space<semaphore_mem>> -> memref<!tpu.dma_semaphore, #tpu.memory_space<semaphore_mem>>
    tpu.enqueue_dma source(%1 : memref<1x128xf32, #tpu.memory_space<any>>) target(%2 : memref<1x128xf32, #tpu.memory_space<vmem>>) target_semaphore(%4 : memref<!tpu.dma_semaphore, #tpu.memory_space<semaphore_mem>>)
    %c1 = arith.constant 1 : index
    %5 = memref.load %arg0[%c1] : memref<8xi32, #tpu.memory_space<smem>>
    %c1_i32 = arith.constant 1 : i32
    %c0_i32_3 = arith.constant 0 : i32
    %6 = tpu.memref_slice %arg1[%5, %c0_i32_3] : memref<256x128xf32, #tpu.memory_space<any>> -> memref<1x128xf32, #tpu.memory_space<any>>
    %c1_i32_4 = arith.constant 1 : i32
    %c0_i32_5 = arith.constant 0 : i32
    %7 = tpu.memref_slice %arg11[%c1_i32_4, %c0_i32_5] : memref<8x128xf32, #tpu.memory_space<vmem>> -> memref<1x128xf32, #tpu.memory_space<vmem>>
    %8 = tpu.memref_slice %arg12[%c1_i32] : memref<8x!tpu.dma_semaphore, #tpu.memory_space<semaphore_mem>> -> memref<1x!tpu.dma_semaphore, #tpu.memory_space<semaphore_mem>>
    %9 = tpu.memref_squeeze %8 : memref<1x!tpu.dma_semaphore, #tpu.memory_space<semaphore_mem>> -> memref<!tpu.dma_semaphore, #tpu.memory_space<semaphore_mem>>
    tpu.enqueue_dma source(%6 : memref<1x128xf32, #tpu.memory_space<any>>) target(%7 : memref<1x128xf32, #tpu.memory_space<vmem>>) target_semaphore(%9 : memref<!tpu.dma_semaphore, #tpu.memory_space<semaphore_mem>>)
    %c2 = arith.constant 2 : index
    %10 = memref.load %arg0[%c2] : memref<8xi32, #tpu.memory_space<smem>>
    %c2_i32 = arith.constant 2 : i32
    %c0_i32_6 = arith.constant 0 : i32
    %11 = tpu.memref_slice %arg1[%10, %c0_i32_6] : memref<256x128xf32, #tpu.memory_space<any>> -> memref<1x128xf32, #tpu.memory_space<any>>
    %c2_i32_7 = arith.constant 2 : i32
    %c0_i32_8 = arith.constant 0 : i32
    %12 = tpu.memref_slice %arg11[%c2_i32_7, %c0_i32_8] : memref<8x128xf32, #tpu.memory_space<vmem>> -> memref<1x128xf32, #tpu.memory_space<vmem>>
    %13 = tpu.memref_slice %arg12[%c2_i32] : memref<8x!tpu.dma_semaphore, #tpu.memory_space<semaphore_mem>> -> memref<1x!tpu.dma_semaphore, #tpu.memory_space<semaphore_mem>>
    %14 = tpu.memref_squeeze %13 : memref<1x!tpu.dma_semaphore, #tpu.memory_space<semaphore_mem>> -> memref<!tpu.dma_semaphore, #tpu.memory_space<semaphore_mem>>
    tpu.enqueue_dma source(%11 : memref<1x128xf32, #tpu.memory_space<any>>) target(%12 : memref<1x128xf32, #tpu.memory_space<vmem>>) target_semaphore(%14 : memref<!tpu.dma_semaphore, #tpu.memory_space<semaphore_mem>>)
    %c3 = arith.constant 3 : index
    %15 = memref.load %arg0[%c3] : memref<8xi32, #tpu.memory_space<smem>>
    %c3_i32 = arith.constant 3 : i32
    %c0_i32_9 = arith.constant 0 : i32
    %16 = tpu.memref_slice %arg1[%15, %c0_i32_9] : memref<256x128xf32, #tpu.memory_space<any>> -> memref<1x128xf32, #tpu.memory_space<any>>
    %c3_i32_10 = arith.constant 3 : i32
    %c0_i32_11 = arith.constant 0 : i32
    %17 = tpu.memref_slice %arg11[%c3_i32_10, %c0_i32_11] : memref<8x128xf32, #tpu.memory_space<vmem>> -> memref<1x128xf32, #tpu.memory_space<vmem>>
    %18 = tpu.memref_slice %arg12[%c3_i32] : memref<8x!tpu.dma_semaphore, #tpu.memory_space<semaphore_mem>> -> memref<1x!tpu.dma_semaphore, #tpu.memory_space<semaphore_mem>>
    %19 = tpu.memref_squeeze %18 : memref<1x!tpu.dma_semaphore, #tpu.memory_space<semaphore_mem>> -> memref<!tpu.dma_semaphore, #tpu.memory_space<semaphore_mem>>
    tpu.enqueue_dma source(%16 : memref<1x128xf32, #tpu.memory_space<any>>) target(%17 : memref<1x128xf32, #tpu.memory_space<vmem>>) target_semaphore(%19 : memref<!tpu.dma_semaphore, #tpu.memory_space<semaphore_mem>>)
    %c4 = arith.constant 4 : index
    %20 = memref.load %arg0[%c4] : memref<8xi32, #tpu.memory_space<smem>>
    %c4_i32 = arith.constant 4 : i32
    %c0_i32_12 = arith.constant 0 : i32
    %21 = tpu.memref_slice %arg1[%20, %c0_i32_12] : memref<256x128xf32, #tpu.memory_space<any>> -> memref<1x128xf32, #tpu.memory_space<any>>
    %c4_i32_13 = arith.constant 4 : i32
    %c0_i32_14 = arith.constant 0 : i32
    %22 = tpu.memref_slice %arg11[%c4_i32_13, %c0_i32_14] : memref<8x128xf32, #tpu.memory_space<vmem>> -> memref<1x128xf32, #tpu.memory_space<vmem>>
    %23 = tpu.memref_slice %arg12[%c4_i32] : memref<8x!tpu.dma_semaphore, #tpu.memory_space<semaphore_mem>> -> memref<1x!tpu.dma_semaphore, #tpu.memory_space<semaphore_mem>>
    %24 = tpu.memref_squeeze %23 : memref<1x!tpu.dma_semaphore, #tpu.memory_space<semaphore_mem>> -> memref<!tpu.dma_semaphore, #tpu.memory_space<semaphore_mem>>
    tpu.enqueue_dma source(%21 : memref<1x128xf32, #tpu.memory_space<any>>) target(%22 : memref<1x128xf32, #tpu.memory_space<vmem>>) target_semaphore(%24 : memref<!tpu.dma_semaphore, #tpu.memory_space<semaphore_mem>>)
    %c5 = arith.constant 5 : index
    %25 = memref.load %arg0[%c5] : memref<8xi32, #tpu.memory_space<smem>>
    %c5_i32 = arith.constant 5 : i32
    %c0_i32_15 = arith.constant 0 : i32
    %26 = tpu.memref_slice %arg1[%25, %c0_i32_15] : memref<256x128xf32, #tpu.memory_space<any>> -> memref<1x128xf32, #tpu.memory_space<any>>
    %c5_i32_16 = arith.constant 5 : i32
    %c0_i32_17 = arith.constant 0 : i32
    %27 = tpu.memref_slice %arg11[%c5_i32_16, %c0_i32_17] : memref<8x128xf32, #tpu.memory_space<vmem>> -> memref<1x128xf32, #tpu.memory_space<vmem>>
    %28 = tpu.memref_slice %arg12[%c5_i32] : memref<8x!tpu.dma_semaphore, #tpu.memory_space<semaphore_mem>> -> memref<1x!tpu.dma_semaphore, #tpu.memory_space<semaphore_mem>>
    %29 = tpu.memref_squeeze %28 : memref<1x!tpu.dma_semaphore, #tpu.memory_space<semaphore_mem>> -> memref<!tpu.dma_semaphore, #tpu.memory_space<semaphore_mem>>
    tpu.enqueue_dma source(%26 : memref<1x128xf32, #tpu.memory_space<any>>) target(%27 : memref<1x128xf32, #tpu.memory_space<vmem>>) target_semaphore(%29 : memref<!tpu.dma_semaphore, #tpu.memory_space<semaphore_mem>>)
    %c6 = arith.constant 6 : index
    %30 = memref.load %arg0[%c6] : memref<8xi32, #tpu.memory_space<smem>>
    %c6_i32 = arith.constant 6 : i32
    %c0_i32_18 = arith.constant 0 : i32
    %31 = tpu.memref_slice %arg1[%30, %c0_i32_18] : memref<256x128xf32, #tpu.memory_space<any>> -> memref<1x128xf32, #tpu.memory_space<any>>
    %c6_i32_19 = arith.constant 6 : i32
    %c0_i32_20 = arith.constant 0 : i32
    %32 = tpu.memref_slice %arg11[%c6_i32_19, %c0_i32_20] : memref<8x128xf32, #tpu.memory_space<vmem>> -> memref<1x128xf32, #tpu.memory_space<vmem>>
    %33 = tpu.memref_slice %arg12[%c6_i32] : memref<8x!tpu.dma_semaphore, #tpu.memory_space<semaphore_mem>> -> memref<1x!tpu.dma_semaphore, #tpu.memory_space<semaphore_mem>>
    %34 = tpu.memref_squeeze %33 : memref<1x!tpu.dma_semaphore, #tpu.memory_space<semaphore_mem>> -> memref<!tpu.dma_semaphore, #tpu.memory_space<semaphore_mem>>
    tpu.enqueue_dma source(%31 : memref<1x128xf32, #tpu.memory_space<any>>) target(%32 : memref<1x128xf32, #tpu.memory_space<vmem>>) target_semaphore(%34 : memref<!tpu.dma_semaphore, #tpu.memory_space<semaphore_mem>>)
    %c7 = arith.constant 7 : index
    %35 = memref.load %arg0[%c7] : memref<8xi32, #tpu.memory_space<smem>>
    %c7_i32 = arith.constant 7 : i32
    %c0_i32_21 = arith.constant 0 : i32
    %36 = tpu.memref_slice %arg1[%35, %c0_i32_21] : memref<256x128xf32, #tpu.memory_space<any>> -> memref<1x128xf32, #tpu.memory_space<any>>
    %c7_i32_22 = arith.constant 7 : i32
    %c0_i32_23 = arith.constant 0 : i32
    %37 = tpu.memref_slice %arg11[%c7_i32_22, %c0_i32_23] : memref<8x128xf32, #tpu.memory_space<vmem>> -> memref<1x128xf32, #tpu.memory_space<vmem>>
    %38 = tpu.memref_slice %arg12[%c7_i32] : memref<8x!tpu.dma_semaphore, #tpu.memory_space<semaphore_mem>> -> memref<1x!tpu.dma_semaphore, #tpu.memory_space<semaphore_mem>>
    %39 = tpu.memref_squeeze %38 : memref<1x!tpu.dma_semaphore, #tpu.memory_space<semaphore_mem>> -> memref<!tpu.dma_semaphore, #tpu.memory_space<semaphore_mem>>
    tpu.enqueue_dma source(%36 : memref<1x128xf32, #tpu.memory_space<any>>) target(%37 : memref<1x128xf32, #tpu.memory_space<vmem>>) target_semaphore(%39 : memref<!tpu.dma_semaphore, #tpu.memory_space<semaphore_mem>>)
    %c0_i32_24 = arith.constant 0 : i32
    %c0_i32_25 = arith.constant 0 : i32
    %40 = tpu.memref_slice %arg1[%0, %c0_i32_25] : memref<256x128xf32, #tpu.memory_space<any>> -> memref<1x128xf32, #tpu.memory_space<any>>
    %c0_i32_26 = arith.constant 0 : i32
    %c0_i32_27 = arith.constant 0 : i32
    %41 = tpu.memref_slice %arg11[%c0_i32_26, %c0_i32_27] : memref<8x128xf32, #tpu.memory_space<vmem>> -> memref<1x128xf32, #tpu.memory_space<vmem>>
    %42 = tpu.memref_slice %arg12[%c0_i32_24] : memref<8x!tpu.dma_semaphore, #tpu.memory_space<semaphore_mem>> -> memref<1x!tpu.dma_semaphore, #tpu.memory_space<semaphore_mem>>
    %43 = tpu.memref_squeeze %42 : memref<1x!tpu.dma_semaphore, #tpu.memory_space<semaphore_mem>> -> memref<!tpu.dma_semaphore, #tpu.memory_space<semaphore_mem>>
    tpu.wait_dma2 semaphore(%43 : memref<!tpu.dma_semaphore, #tpu.memory_space<semaphore_mem>>) src(%40 : memref<1x128xf32, #tpu.memory_space<any>>) dst(%41 : memref<1x128xf32, #tpu.memory_space<vmem>>)
    %c1_i32_28 = arith.constant 1 : i32
    %c0_i32_29 = arith.constant 0 : i32
    %44 = tpu.memref_slice %arg1[%5, %c0_i32_29] : memref<256x128xf32, #tpu.memory_space<any>> -> memref<1x128xf32, #tpu.memory_space<any>>
    %c1_i32_30 = arith.constant 1 : i32
    %c0_i32_31 = arith.constant 0 : i32
    %45 = tpu.memref_slice %arg11[%c1_i32_30, %c0_i32_31] : memref<8x128xf32, #tpu.memory_space<vmem>> -> memref<1x128xf32, #tpu.memory_space<vmem>>
    %46 = tpu.memref_slice %arg12[%c1_i32_28] : memref<8x!tpu.dma_semaphore, #tpu.memory_space<semaphore_mem>> -> memref<1x!tpu.dma_semaphore, #tpu.memory_space<semaphore_mem>>
    %47 = tpu.memref_squeeze %46 : memref<1x!tpu.dma_semaphore, #tpu.memory_space<semaphore_mem>> -> memref<!tpu.dma_semaphore, #tpu.memory_space<semaphore_mem>>
    tpu.wait_dma2 semaphore(%47 : memref<!tpu.dma_semaphore, #tpu.memory_space<semaphore_mem>>) src(%44 : memref<1x128xf32, #tpu.memory_space<any>>) dst(%45 : memref<1x128xf32, #tpu.memory_space<vmem>>)
    %c2_i32_32 = arith.constant 2 : i32
    %c0_i32_33 = arith.constant 0 : i32
    %48 = tpu.memref_slice %arg1[%10, %c0_i32_33] : memref<256x128xf32, #tpu.memory_space<any>> -> memref<1x128xf32, #tpu.memory_space<any>>
    %c2_i32_34 = arith.constant 2 : i32
    %c0_i32_35 = arith.constant 0 : i32
    %49 = tpu.memref_slice %arg11[%c2_i32_34, %c0_i32_35] : memref<8x128xf32, #tpu.memory_space<vmem>> -> memref<1x128xf32, #tpu.memory_space<vmem>>
    %50 = tpu.memref_slice %arg12[%c2_i32_32] : memref<8x!tpu.dma_semaphore, #tpu.memory_space<semaphore_mem>> -> memref<1x!tpu.dma_semaphore, #tpu.memory_space<semaphore_mem>>
    %51 = tpu.memref_squeeze %50 : memref<1x!tpu.dma_semaphore, #tpu.memory_space<semaphore_mem>> -> memref<!tpu.dma_semaphore, #tpu.memory_space<semaphore_mem>>
    tpu.wait_dma2 semaphore(%51 : memref<!tpu.dma_semaphore, #tpu.memory_space<semaphore_mem>>) src(%48 : memref<1x128xf32, #tpu.memory_space<any>>) dst(%49 : memref<1x128xf32, #tpu.memory_space<vmem>>)
    %c3_i32_36 = arith.constant 3 : i32
    %c0_i32_37 = arith.constant 0 : i32
    %52 = tpu.memref_slice %arg1[%15, %c0_i32_37] : memref<256x128xf32, #tpu.memory_space<any>> -> memref<1x128xf32, #tpu.memory_space<any>>
    %c3_i32_38 = arith.constant 3 : i32
    %c0_i32_39 = arith.constant 0 : i32
    %53 = tpu.memref_slice %arg11[%c3_i32_38, %c0_i32_39] : memref<8x128xf32, #tpu.memory_space<vmem>> -> memref<1x128xf32, #tpu.memory_space<vmem>>
    %54 = tpu.memref_slice %arg12[%c3_i32_36] : memref<8x!tpu.dma_semaphore, #tpu.memory_space<semaphore_mem>> -> memref<1x!tpu.dma_semaphore, #tpu.memory_space<semaphore_mem>>
    %55 = tpu.memref_squeeze %54 : memref<1x!tpu.dma_semaphore, #tpu.memory_space<semaphore_mem>> -> memref<!tpu.dma_semaphore, #tpu.memory_space<semaphore_mem>>
    tpu.wait_dma2 semaphore(%55 : memref<!tpu.dma_semaphore, #tpu.memory_space<semaphore_mem>>) src(%52 : memref<1x128xf32, #tpu.memory_space<any>>) dst(%53 : memref<1x128xf32, #tpu.memory_space<vmem>>)
    %c4_i32_40 = arith.constant 4 : i32
    %c0_i32_41 = arith.constant 0 : i32
    %56 = tpu.memref_slice %arg1[%20, %c0_i32_41] : memref<256x128xf32, #tpu.memory_space<any>> -> memref<1x128xf32, #tpu.memory_space<any>>
    %c4_i32_42 = arith.constant 4 : i32
    %c0_i32_43 = arith.constant 0 : i32
    %57 = tpu.memref_slice %arg11[%c4_i32_42, %c0_i32_43] : memref<8x128xf32, #tpu.memory_space<vmem>> -> memref<1x128xf32, #tpu.memory_space<vmem>>
    %58 = tpu.memref_slice %arg12[%c4_i32_40] : memref<8x!tpu.dma_semaphore, #tpu.memory_space<semaphore_mem>> -> memref<1x!tpu.dma_semaphore, #tpu.memory_space<semaphore_mem>>
    %59 = tpu.memref_squeeze %58 : memref<1x!tpu.dma_semaphore, #tpu.memory_space<semaphore_mem>> -> memref<!tpu.dma_semaphore, #tpu.memory_space<semaphore_mem>>
    tpu.wait_dma2 semaphore(%59 : memref<!tpu.dma_semaphore, #tpu.memory_space<semaphore_mem>>) src(%56 : memref<1x128xf32, #tpu.memory_space<any>>) dst(%57 : memref<1x128xf32, #tpu.memory_space<vmem>>)
    %c5_i32_44 = arith.constant 5 : i32
    %c0_i32_45 = arith.constant 0 : i32
    %60 = tpu.memref_slice %arg1[%25, %c0_i32_45] : memref<256x128xf32, #tpu.memory_space<any>> -> memref<1x128xf32, #tpu.memory_space<any>>
    %c5_i32_46 = arith.constant 5 : i32
    %c0_i32_47 = arith.constant 0 : i32
    %61 = tpu.memref_slice %arg11[%c5_i32_46, %c0_i32_47] : memref<8x128xf32, #tpu.memory_space<vmem>> -> memref<1x128xf32, #tpu.memory_space<vmem>>
    %62 = tpu.memref_slice %arg12[%c5_i32_44] : memref<8x!tpu.dma_semaphore, #tpu.memory_space<semaphore_mem>> -> memref<1x!tpu.dma_semaphore, #tpu.memory_space<semaphore_mem>>
    %63 = tpu.memref_squeeze %62 : memref<1x!tpu.dma_semaphore, #tpu.memory_space<semaphore_mem>> -> memref<!tpu.dma_semaphore, #tpu.memory_space<semaphore_mem>>
    tpu.wait_dma2 semaphore(%63 : memref<!tpu.dma_semaphore, #tpu.memory_space<semaphore_mem>>) src(%60 : memref<1x128xf32, #tpu.memory_space<any>>) dst(%61 : memref<1x128xf32, #tpu.memory_space<vmem>>)
    %c6_i32_48 = arith.constant 6 : i32
    %c0_i32_49 = arith.constant 0 : i32
    %64 = tpu.memref_slice %arg1[%30, %c0_i32_49] : memref<256x128xf32, #tpu.memory_space<any>> -> memref<1x128xf32, #tpu.memory_space<any>>
    %c6_i32_50 = arith.constant 6 : i32
    %c0_i32_51 = arith.constant 0 : i32
    %65 = tpu.memref_slice %arg11[%c6_i32_50, %c0_i32_51] : memref<8x128xf32, #tpu.memory_space<vmem>> -> memref<1x128xf32, #tpu.memory_space<vmem>>
    %66 = tpu.memref_slice %arg12[%c6_i32_48] : memref<8x!tpu.dma_semaphore, #tpu.memory_space<semaphore_mem>> -> memref<1x!tpu.dma_semaphore, #tpu.memory_space<semaphore_mem>>
    %67 = tpu.memref_squeeze %66 : memref<1x!tpu.dma_semaphore, #tpu.memory_space<semaphore_mem>> -> memref<!tpu.dma_semaphore, #tpu.memory_space<semaphore_mem>>
    tpu.wait_dma2 semaphore(%67 : memref<!tpu.dma_semaphore, #tpu.memory_space<semaphore_mem>>) src(%64 : memref<1x128xf32, #tpu.memory_space<any>>) dst(%65 : memref<1x128xf32, #tpu.memory_space<vmem>>)
    %c7_i32_52 = arith.constant 7 : i32
    %c0_i32_53 = arith.constant 0 : i32
    %68 = tpu.memref_slice %arg1[%35, %c0_i32_53] : memref<256x128xf32, #tpu.memory_space<any>> -> memref<1x128xf32, #tpu.memory_space<any>>
    %c7_i32_54 = arith.constant 7 : i32
    %c0_i32_55 = arith.constant 0 : i32
    %69 = tpu.memref_slice %arg11[%c7_i32_54, %c0_i32_55] : memref<8x128xf32, #tpu.memory_space<vmem>> -> memref<1x128xf32, #tpu.memory_space<vmem>>
    %70 = tpu.memref_slice %arg12[%c7_i32_52] : memref<8x!tpu.dma_semaphore, #tpu.memory_space<semaphore_mem>> -> memref<1x!tpu.dma_semaphore, #tpu.memory_space<semaphore_mem>>
    %71 = tpu.memref_squeeze %70 : memref<1x!tpu.dma_semaphore, #tpu.memory_space<semaphore_mem>> -> memref<!tpu.dma_semaphore, #tpu.memory_space<semaphore_mem>>
    tpu.wait_dma2 semaphore(%71 : memref<!tpu.dma_semaphore, #tpu.memory_space<semaphore_mem>>) src(%68 : memref<1x128xf32, #tpu.memory_space<any>>) dst(%69 : memref<1x128xf32, #tpu.memory_space<vmem>>)
    %c0_56 = arith.constant 0 : index
    %c0_57 = arith.constant 0 : index
    %72 = vector.load %arg11[%c0_56, %c0_57] : memref<8x128xf32, #tpu.memory_space<vmem>>, vector<8x128xf32>
    %cst = arith.constant 0.000000e+00 : f32
    %73 = vector.broadcast %cst : f32 to vector<8x128xf32>
    %74 = arith.maximumf %72, %73 : vector<8x128xf32>
    %c0_58 = arith.constant 0 : index
    %c0_59 = arith.constant 0 : index
    %75 = vector.load %arg2[%c0_58, %c0_59] : memref<8x128xf32, #tpu.memory_space<vmem>>, vector<8x128xf32>
    %c0_60 = arith.constant 0 : index
    %c0_61 = arith.constant 0 : index
    %76 = vector.load %arg3[%c0_60, %c0_61] : memref<8x128xf32, #tpu.memory_space<vmem>>, vector<8x128xf32>
    %77 = tpu.concatenate %74, %75 in 1 : vector<8x128xf32>, vector<8x128xf32> -> vector<8x256xf32>
    %78 = arith.truncf %77 : vector<8x256xf32> to vector<8x256xbf16>
    %c0_62 = arith.constant 0 : index
    %c0_63 = arith.constant 0 : index
    %79 = vector.load %arg4[%c0_62, %c0_63] : memref<256x512xbf16, #tpu.memory_space<vmem>>, vector<256x512xbf16>
    %cst_64 = arith.constant dense<0.000000e+00> : vector<8x512xf32>
    %80 = tpu.matmul %78, %79, %cst_64 {dimension_numbers = #tpu.dot_dimension_numbers<[1], [0], [0], [1], [0, 0, 1, 1], [], []>} : vector<8x256xbf16>, vector<256x512xbf16>, vector<8x512xf32> -> vector<8x512xf32>
    %c0_65 = arith.constant 0 : index
    %c0_66 = arith.constant 0 : index
    %81 = vector.load %arg5[%c0_65, %c0_66] : memref<1x512xf32, #tpu.memory_space<vmem>>, vector<1x512xf32>
    %82 = vector.broadcast %81 : vector<1x512xf32> to vector<8x512xf32>
    %83 = arith.addf %80, %82 : vector<8x512xf32>
    %84 = vector.extract_strided_slice %83 {offsets = [0, 0], sizes = [8, 128], strides = [1, 1]} : vector<8x512xf32> to vector<8x128xf32>
    %85 = arith.negf %84 : vector<8x128xf32>
    %86 = math.exp %85 : vector<8x128xf32>
    %cst_67 = arith.constant 1.000000e+00 : f32
    %87 = vector.broadcast %cst_67 : f32 to vector<8x128xf32>
    %88 = arith.addf %87, %86 : vector<8x128xf32>
    %89 = arith.divf %87, %88 : vector<8x128xf32>
    %90 = vector.extract_strided_slice %83 {offsets = [0, 128], sizes = [8, 128], strides = [1, 1]} : vector<8x512xf32> to vector<8x128xf32>
    %91 = arith.negf %90 : vector<8x128xf32>
    %92 = math.exp %91 : vector<8x128xf32>
    %cst_68 = arith.constant 1.000000e+00 : f32
    %93 = vector.broadcast %cst_68 : f32 to vector<8x128xf32>
    %94 = arith.addf %93, %92 : vector<8x128xf32>
    %95 = arith.divf %93, %94 : vector<8x128xf32>
    %96 = vector.extract_strided_slice %83 {offsets = [0, 256], sizes = [8, 128], strides = [1, 1]} : vector<8x512xf32> to vector<8x128xf32>
    %97 = math.tanh %96 : vector<8x128xf32>
    %98 = vector.extract_strided_slice %83 {offsets = [0, 384], sizes = [8, 128], strides = [1, 1]} : vector<8x512xf32> to vector<8x128xf32>
    %99 = arith.negf %98 : vector<8x128xf32>
    %100 = math.exp %99 : vector<8x128xf32>
    %cst_69 = arith.constant 1.000000e+00 : f32
    %101 = vector.broadcast %cst_69 : f32 to vector<8x128xf32>
    %102 = arith.addf %101, %100 : vector<8x128xf32>
    %103 = arith.divf %101, %102 : vector<8x128xf32>
    %104 = arith.mulf %95, %76 : vector<8x128xf32>
    %105 = arith.mulf %89, %97 : vector<8x128xf32>
    %106 = arith.addf %104, %105 : vector<8x128xf32>
    %107 = math.tanh %106 : vector<8x128xf32>
    %108 = arith.mulf %103, %107 : vector<8x128xf32>
    %c0_70 = arith.constant 0 : index
    %c0_71 = arith.constant 0 : index
    %109 = vector.load %arg9[%c0_70, %c0_71] : memref<8x128xf32, #tpu.memory_space<vmem>>, vector<8x128xf32>
    tpu.vector_store %arg9[%c0_70, %c0_71], %108 {strides = array<i32>} : memref<8x128xf32, #tpu.memory_space<vmem>>, vector<8x128xf32>,
    %c0_72 = arith.constant 0 : index
    %c0_73 = arith.constant 0 : index
    %110 = vector.load %arg10[%c0_72, %c0_73] : memref<8x128xf32, #tpu.memory_space<vmem>>, vector<8x128xf32>
    tpu.vector_store %arg10[%c0_72, %c0_73], %106 {strides = array<i32>} : memref<8x128xf32, #tpu.memory_space<vmem>>, vector<8x128xf32>,
    %111 = arith.truncf %108 : vector<8x128xf32> to vector<8x128xbf16>
    %c0_74 = arith.constant 0 : index
    %c0_75 = arith.constant 0 : index
    %112 = vector.load %arg6[%c0_74, %c0_75] : memref<128x256xbf16, #tpu.memory_space<vmem>>, vector<128x256xbf16>
    %cst_76 = arith.constant dense<0.000000e+00> : vector<8x256xf32>
    %113 = tpu.matmul %111, %112, %cst_76 {dimension_numbers = #tpu.dot_dimension_numbers<[1], [0], [0], [1], [0, 0, 1, 1], [], []>} : vector<8x128xbf16>, vector<128x256xbf16>, vector<8x256xf32> -> vector<8x256xf32>
    %c0_77 = arith.constant 0 : index
    %c0_78 = arith.constant 0 : index
    %114 = vector.load %arg7[%c0_77, %c0_78] : memref<1x256xf32, #tpu.memory_space<vmem>>, vector<1x256xf32>
    %115 = vector.broadcast %114 : vector<1x256xf32> to vector<8x256xf32>
    %116 = arith.addf %113, %115 : vector<8x256xf32>
    %cst_79 = arith.constant dense<0xFF800000> : vector<8xf32>
    %117 = vector.multi_reduction <maximumf>, %116, %cst_79 [1] : vector<8x256xf32> to vector<8xf32>
    %118 = vector.shape_cast %117 : vector<8xf32> to vector<8x1xf32>
    %119 = vector.broadcast %118 : vector<8x1xf32> to vector<8x256xf32>
    %120 = arith.subf %116, %119 : vector<8x256xf32>
    %121 = math.exp %120 : vector<8x256xf32>
    %cst_80 = arith.constant dense<0.000000e+00> : vector<8xf32>
    %122 = vector.multi_reduction <add>, %121, %cst_80 [1] : vector<8x256xf32> to vector<8xf32>
    %123 = vector.shape_cast %122 : vector<8xf32> to vector<8x1xf32>
    %124 = math.log %123 : vector<8x1xf32>
    %125 = vector.broadcast %124 : vector<8x1xf32> to vector<8x256xf32>
    %126 = arith.subf %120, %125 : vector<8x256xf32>
    %c0_81 = arith.constant 0 : index
    %c0_82 = arith.constant 0 : index
    %127 = vector.load %arg8[%c0_81, %c0_82] : memref<8x256xf32, #tpu.memory_space<vmem>>, vector<8x256xf32>
    tpu.vector_store %arg8[%c0_81, %c0_82], %126 {strides = array<i32>} : memref<8x256xf32, #tpu.memory_space<vmem>>, vector<8x256xf32>,
    return
  }
}

</mosaic_0001>

<bundles_post_ra>
// kernel: tpu_custom_call.1
= control target key start
LH: loop header
LB: loop body
LE: loop exit
PB: predicated region body
PF: predicated region fallthrough
CT: control target
= control target key end

     0   :  { %16 = vsyncpa [#allocation7], 0  ;;  %s2003_s0 = inlined_call_operand.vmem [shape: s32[8], index: 0, kind: input, shape index: {}]   ;;  %s2004_s1 = inlined_call_operand.hbm [shape: f32[256,128], index: 1, kind: input, shape index: {}]   ;;  %s2005_s2 = inlined_call_operand.hbm [shape: f32[8,128], index: 2, kind: input, shape index: {}, may-alias: {2,9}]   ;;  %s2006_s3 = inlined_call_operand.hbm [shape: f32[8,128], index: 3, kind: input, shape index: {}, may-alias: {3,10}]   ;;  %s2007_s4 = inlined_call_operand.hbm [shape: bf16[256,512], index: 4, kind: input, shape index: {}]   ;;  %s2008_s5 = inlined_call_operand.vmem [shape: f32[1,512], index: 5, kind: input, shape index: {}]   ;;  %s2009_s6 = inlined_call_operand.hbm [shape: bf16[128,256], index: 6, kind: input, shape index: {}]   ;;  %s2010_s7 = inlined_call_operand.vmem [shape: f32[1,256], index: 7, kind: input, shape index: {}]   ;;  %s2011_s8 = inlined_call_operand.hbm [shape: f32[8,256], index: 8, kind: output, shape index: {0}]   ;;  %s2012_s9 = inlined_call_operand.hbm [shape: f32[8,128], index: 9, kind: output, shape index: {1}, may-alias: {2,9}]   ;;  %s2013_s10 = inlined_call_operand.hbm [shape: f32[8,128], index: 10, kind: output, shape index: {2}, may-alias: {3,10}]  }
   0x1   :  { %17 = vsyncpa [#allocation5], 0 }
   0x2   :  { %18 = vsyncpa [#allocation10], 0 }
   0x3   :  { %19 = vsyncpa [#allocation13], 0 }
   0x4   :  { %20 = vsyncpa [#allocation6], 0 }
   0x5   :  { %21 = vsyncpa [#allocation16], 0  ;;  %s28_s15 = sshll.u32 %s2003_s0, 4  ;;  %s1699_s16 = smov [#allocation9]   ;;  %s29_s15 = int_to_ptr.vmem [resolvable:$true] %s28_s15 }
   0x6   :  { %s48_s17 = sshll.u32 %s1699_s16, 4  ;;  %s1313_s20 = scalar_lea.hbm %s2006_s3, 128  ;;  %s49_s17 = int_to_ptr.vmem [resolvable:$true] %s48_s17 }
   0x7   :  { %p1314_p0 = scmp.ne.s32.totalorder %s2006_s3, %s1313_s20  ;;  %p1317_p1 = scmp.lt.u32.totalorder %s1313_s20, %s2006_s3 }
   0x9   :  { %p1319_p2 = pnand %p1317_p1, %p1314_p0 }
   0xb   :  { %1322 = shalt.err (!%p1319_p2)
}
   0xc   :  { %s1323_s25 = scalar_lea.vmem %s49_s17, 128  ;;  %p1328_p4 = scmp.lt.s32.totalorder %s49_s17, %s49_s17 }
   0xd   :  { %p1324_p3 = scmp.ne.s32.totalorder %s49_s17, %s1323_s25  ;;  %p1329_p5 = scmp.lt.s32.totalorder %s1323_s25, %s1323_s25 }
   0xf   :  { %p1330_p6 = por %p1329_p5, %p1328_p4 }
  0x11   :  { %p1331_p7 = pnand %p1330_p6, %p1324_p3 }
  0x13   :  { %1334 = shalt.err (!%p1331_p7)
}
  0x14   :  { %51 = dma.hbm_to_vmem [thread:$0]  %s2006_s3, 128, %s49_s17, [#allocation10]  }
  0x15   :  { %s1335_s27 = scalar_lea.vmem %s29_s15, 16  ;;  %p1340_p9 = scmp.lt.s32.totalorder %s29_s15, %s29_s15 }
  0x16   :  { %p1336_p8 = scmp.ne.s32.totalorder %s29_s15, %s1335_s27  ;;  %p1341_p10 = scmp.lt.s32.totalorder %s1335_s27, %s1335_s27 }
  0x18   :  { %p1342_p11 = por %p1341_p10, %p1340_p9 }
  0x1a   :  { %p1343_p12 = pnand %p1342_p11, %p1336_p8 }
  0x1c   :  { %1346 = shalt.err (!%p1343_p12)
}
  0x1d   :  { %s1700_s28 = smov [#allocation4]   ;;  %s1701_s29 = smov [#allocation8]  }
  0x1e   :  { %31 = dma.vmem_to_smem %s29_s15, 16, %s1700_s28, [#allocation7]  }
  0x1f   :  { %s38_s30 = sshll.u32 %s1701_s29, 4  ;;  %s1702_s11 = smov [#allocation11]   ;;  %s39_s30 = int_to_ptr.vmem [resolvable:$true] %s38_s30 }
  0x20   :  { %s57_s12 = sshll.u32 %s1702_s11, 4  ;;  %s1347_s3 = scalar_lea.hbm %s2005_s2, 128  ;;  %s1790_s12 = int_to_ptr.vmem [resolvable:$true] %s57_s12 }
  0x21   :  { %p1348_p13 = scmp.ne.s32.totalorder %s2005_s2, %s1347_s3  ;;  %p1351_p0 = scmp.lt.u32.totalorder %s1347_s3, %s2005_s2 }
  0x23   :  { %p1353_p1 = pnand %p1351_p0, %p1348_p13 }
  0x25   :  { %1356 = shalt.err (!%p1353_p1)
}
  0x26   :  { %s1357_s15 = scalar_lea.vmem %s39_s30, 128  ;;  %p1362_p3 = scmp.lt.s32.totalorder %s39_s30, %s39_s30 }
  0x27   :  { %p1358_p2 = scmp.ne.s32.totalorder %s39_s30, %s1357_s15  ;;  %p1363_p4 = scmp.lt.s32.totalorder %s1357_s15, %s1357_s15 }
  0x29   :  { %p1364_p5 = por %p1363_p4, %p1362_p3 }
  0x2b   :  { %p1365_p6 = pnand %p1364_p5, %p1358_p2 }
  0x2d   :  { %1368 = shalt.err (!%p1365_p6)
}
  0x2e   :  { %41 = dma.hbm_to_vmem [thread:$0]  %s2005_s2, 128, %s39_s30, [#allocation5]  }
  0x2f   :  { %s1369_s24 = scalar_lea.hbm %s2007_s4, 8192 }
  0x30   :  { %p1370_p7 = scmp.ne.s32.totalorder %s2007_s4, %s1369_s24  ;;  %p1373_p8 = scmp.lt.u32.totalorder %s1369_s24, %s2007_s4 }
  0x32   :  { %p1375_p9 = pnand %p1373_p8, %p1370_p7 }
  0x34   :  { %1378 = shalt.err (!%p1375_p9)
}
  0x35   :  { %s1379_s28 = scalar_lea.vmem %s1790_s12, 8192  ;;  %p1384_p11 = scmp.lt.s32.totalorder %s1790_s12, %s1790_s12 }
  0x36   :  { %p1380_p10 = scmp.ne.s32.totalorder %s1790_s12, %s1379_s28  ;;  %p1385_p12 = scmp.lt.s32.totalorder %s1379_s28, %s1379_s28 }
  0x38   :  { %p1386_p13 = por %p1385_p12, %p1384_p11 }
  0x3a   :  { %p1387_p0 = pnand %p1386_p13, %p1380_p10 }
  0x3c   :  { %1390 = shalt.err (!%p1387_p0)
}
  0x3d   :  { %s1703_s2 = smov 256   ;;  %s1704_s29 = smov 16  }
  0x3e   :  { %63 = dma.hbm_to_vmem [thread:$0]  %s2007_s4, 8192, %s1790_s12, [#allocation10], %s1703_s2, %s1703_s2, %s1704_s29  }
  0x3f   :  { %s1705_s13 = smov [#allocation12]   ;;  %s1391_s17 = scalar_lea.hbm %s2009_s6, 2048 }
  0x40   :  { %s71_s14 = sshll.u32 %s1705_s13, 4  ;;  %p1392_p1 = scmp.ne.s32.totalorder %s2009_s6, %s1391_s17  ;;  %s72_s14 = int_to_ptr.vmem [resolvable:$true] %s71_s14 }
  0x41   :  { %p1395_p2 = scmp.lt.u32.totalorder %s1391_s17, %s2009_s6 }
  0x43   :  { %p1397_p3 = pnand %p1395_p2, %p1392_p1 }
  0x45   :  { %1400 = shalt.err (!%p1397_p3)
}
  0x46   :  { %s1401_s21 = scalar_lea.vmem %s72_s14, 2048  ;;  %p1406_p5 = scmp.lt.s32.totalorder %s72_s14, %s72_s14 }
  0x47   :  { %p1402_p4 = scmp.ne.s32.totalorder %s72_s14, %s1401_s21  ;;  %p1407_p6 = scmp.lt.s32.totalorder %s1401_s21, %s1401_s21 }
  0x49   :  { %p1408_p7 = por %p1407_p6, %p1406_p5 }
  0x4b   :  { %p1409_p8 = pnand %p1408_p7, %p1402_p4 }
  0x4d   :  { %1412 = shalt.err (!%p1409_p8)
}
  0x4e   :  { %s1706_s4 = smov 128   ;;  %s1707_s12 = smov 8  }
  0x4f   :  { %77 = dma.hbm_to_vmem [thread:$0]  %s2009_s6, 2048, %s72_s14, [#allocation13], %s1706_s4, %s1706_s4, %s1707_s12  }
  0x50   :  { %1671 = dma.done.wait [#allocation7], 16  }
  0x51   :  { %1672 = vsyncadd [#allocation7], 4294967280 }
  0x52   :  { %1673 = dma.done.wait [#allocation5], 128  }
  0x53   :  { %1674 = vsyncadd [#allocation5], 4294967168 }
  0x54   :  { %1675 = dma.done.wait [#allocation10], 8320  }
  0x55   :  { %1676 = vsyncadd [#allocation10], 4294958976 }
  0x56   :  { %1677 = dma.done.wait [#allocation13], 2048  }
  0x57   :  { %1678 = vsyncadd [#allocation13], 4294965248 }
  0x58   :  { %95 = sfence }
  0x59   :  { %s97_s24 = sld [smem:[#allocation4]]  ;;  %s1708_s25 = smov [#allocation2]  }
  0x5a   :  { %s107_s0 = sshll.u32 %s1708_s25, 4  ;;  %s1833_s26 = sld [smem:[#allocation4 + $0x1]]  ;;  %s1835_s0 = int_to_ptr.vmem [resolvable:$true] %s107_s0 }
  0x5b   :  { %s1709_s27 = smov [#allocation2 + $0x1]   ;;  %s1837_s6 = sld [smem:[#allocation4 + $0x2]] }
  0x5c   :  { %s123_s28 = sshll.u32 %s1709_s27, 4  ;;  %s1710_s2 = smov [#allocation2 + $0x2]   ;;  %s1839_s28 = int_to_ptr.vmem [resolvable:$true] %s123_s28 }
  0x5d   :  { %s139_s29 = sshll.u32 %s1710_s2, 4  ;;  %s1841_s30 = sld [smem:[#allocation4 + $0x3]]  ;;  %s1843_s29 = int_to_ptr.vmem [resolvable:$true] %s139_s29 }
  0x5e   :  { %s1852_s15 = scalar_lea.hbm %s2004_s1, 4096 }
  0x5f   :  { %s1044_s11 = sshll.u32 %s97_s24, 4 }
  0x60   :  { %s99_s3 = scalar_lea.hbm %s2004_s1, %s1044_s11  ;;  %s1046_s16 = sshll.u32 %s1833_s26, 4 }
  0x61   :  { %s1413_s17 = scalar_lea.hbm %s99_s3, 16  ;;  %p1416_p10 = scmp.lt.u32.totalorder %s99_s3, %s2004_s1 }
  0x62   :  { %p1414_p9 = scmp.ne.s32.totalorder %s99_s3, %s1413_s17  ;;  %p1417_p11 = scmp.lt.u32.totalorder %s1852_s15, %s1413_s17 }
  0x63   :  { %p1419_p13 = scmp.lt.u32.totalorder %s1413_s17, %s99_s3 }
  0x64   :  { %p1418_p12 = por %p1417_p11, %p1416_p10 }
  0x66   :  { %p1420_p0 = por %p1419_p13, %p1418_p12 }
  0x68   :  { %p1421_p1 = pnand %p1420_p0, %p1414_p9 }
  0x6a   :  { %1424 = shalt.err (!%p1421_p1)  }
  0x6b   :  { %s1425_s4 = scalar_lea.vmem %s1835_s0, 16  ;;  %s1861_s12 = scalar_lea.vmem %s1835_s0, 128 }
  0x6c   :  { %p1426_p2 = scmp.ne.s32.totalorder %s1835_s0, %s1425_s4  ;;  %p1430_p3 = scmp.lt.s32.totalorder %s1835_s0, %s1835_s0 }
  0x6d   :  { %p1431_p4 = scmp.lt.s32.totalorder %s1861_s12, %s1425_s4 }
  0x6f   :  { %p1432_p5 = por %p1431_p4, %p1430_p3 }
  0x71   :  { %p1433_p6 = pnand %p1432_p5, %p1426_p2 }
  0x73   :  { %1436 = shalt.err (!%p1433_p6)  }
  0x74   :  { %110 = dma.hbm_to_vmem [thread:$0]  %s99_s3, 16, %s1835_s0, [#allocation3] }
  0x75   :  { %s113_s24 = scalar_lea.hbm %s2004_s1, %s1046_s16  ;;  %s1048_s25 = sshll.u32 %s1837_s6, 4 }
  0x76   :  { %s1437_s26 = scalar_lea.hbm %s113_s24, 16  ;;  %p1440_p8 = scmp.lt.u32.totalorder %s113_s24, %s2004_s1 }
  0x77   :  { %p1438_p7 = scmp.ne.s32.totalorder %s113_s24, %s1437_s26  ;;  %p1441_p9 = scmp.lt.u32.totalorder %s1852_s15, %s1437_s26 }
  0x78   :  { %p1443_p11 = scmp.lt.u32.totalorder %s1437_s26, %s113_s24 }
  0x79   :  { %p1442_p10 = por %p1441_p9, %p1440_p8 }
  0x7b   :  { %p1444_p12 = por %p1443_p11, %p1442_p10 }
  0x7d   :  { %p1445_p13 = pnand %p1444_p12, %p1438_p7 }
  0x7f   :  { %1448 = shalt.err (!%p1445_p13)  }
  0x80   :  { %s1449_s11 = scalar_lea.vmem %s1839_s28, 16  ;;  %p1454_p1 = scmp.lt.s32.totalorder %s1839_s28, %s1835_s0 }
  0x81   :  { %p1450_p0 = scmp.ne.s32.totalorder %s1839_s28, %s1449_s11  ;;  %p1455_p2 = scmp.lt.s32.totalorder %s1861_s12, %s1449_s11 }
  0x83   :  { %p1456_p3 = por %p1455_p2, %p1454_p1 }
  0x85   :  { %p1457_p4 = pnand %p1456_p3, %p1450_p0 }
  0x87   :  { %1460 = shalt.err (!%p1457_p4)  }
  0x88   :  { %126 = dma.hbm_to_vmem [thread:$0]  %s113_s24, 16, %s1839_s28, [#allocation3 + $0x1] }
  0x89   :  { %s129_s14 = scalar_lea.hbm %s2004_s1, %s1048_s25  ;;  %s1050_s3 = sshll.u32 %s1841_s30, 4 }
  0x8a   :  { %s1461_s16 = scalar_lea.hbm %s129_s14, 16  ;;  %p1464_p6 = scmp.lt.u32.totalorder %s129_s14, %s2004_s1 }
  0x8b   :  { %p1462_p5 = scmp.ne.s32.totalorder %s129_s14, %s1461_s16  ;;  %p1465_p7 = scmp.lt.u32.totalorder %s1852_s15, %s1461_s16 }
  0x8c   :  { %p1467_p9 = scmp.lt.u32.totalorder %s1461_s16, %s129_s14 }
  0x8d   :  { %p1466_p8 = por %p1465_p7, %p1464_p6 }
  0x8f   :  { %p1468_p10 = por %p1467_p9, %p1466_p8 }
  0x91   :  { %p1469_p11 = pnand %p1468_p10, %p1462_p5 }
  0x93   :  { %1472 = shalt.err (!%p1469_p11)  }
  0x94   :  { %s1473_s28 = scalar_lea.vmem %s1843_s29, 16  ;;  %p1478_p13 = scmp.lt.s32.totalorder %s1843_s29, %s1835_s0 }
  0x95   :  { %p1474_p12 = scmp.ne.s32.totalorder %s1843_s29, %s1473_s28  ;;  %p1479_p0 = scmp.lt.s32.totalorder %s1861_s12, %s1473_s28 }
  0x97   :  { %p1480_p1 = por %p1479_p0, %p1478_p13 }
  0x99   :  { %p1481_p2 = pnand %p1480_p1, %p1474_p12 }
  0x9b   :  { %1484 = shalt.err (!%p1481_p2)  }
  0x9c   :  { %142 = dma.hbm_to_vmem [thread:$0]  %s129_s14, 16, %s1843_s29, [#allocation3 + $0x2] }
  0x9d   :  { %s145_s20 = scalar_lea.hbm %s2004_s1, %s1050_s3  ;;  %s1711_s21 = smov [#allocation2 + $0x3]  }
  0x9e   :  { %s155_s4 = sshll.u32 %s1711_s21, 4  ;;  %s1898_s22 = sld [smem:[#allocation4 + $0x4]]  ;;  %s156_s4 = int_to_ptr.vmem [resolvable:$true] %s155_s4 }
  0x9f   :  { %s1485_s23 = scalar_lea.hbm %s145_s20, 16  ;;  %p1488_p4 = scmp.lt.u32.totalorder %s145_s20, %s2004_s1 }
  0xa0   :  { %p1486_p3 = scmp.ne.s32.totalorder %s145_s20, %s1485_s23  ;;  %p1489_p5 = scmp.lt.u32.totalorder %s1852_s15, %s1485_s23 }
  0xa1   :  { %p1491_p7 = scmp.lt.u32.totalorder %s1485_s23, %s145_s20 }
  0xa2   :  { %p1490_p6 = por %p1489_p5, %p1488_p4 }
  0xa4   :  { %p1492_p8 = por %p1491_p7, %p1490_p6 }
  0xa6   :  { %p1493_p9 = pnand %p1492_p8, %p1486_p3 }
  0xa8   :  { %1496 = shalt.err (!%p1493_p9)  }
  0xa9   :  { %s1497_s29 = scalar_lea.vmem %s156_s4, 16  ;;  %p1502_p11 = scmp.lt.s32.totalorder %s156_s4, %s1835_s0 }
  0xaa   :  { %p1498_p10 = scmp.ne.s32.totalorder %s156_s4, %s1497_s29  ;;  %p1503_p12 = scmp.lt.s32.totalorder %s1861_s12, %s1497_s29 }
  0xac   :  { %p1504_p13 = por %p1503_p12, %p1502_p11 }
  0xae   :  { %p1505_p0 = pnand %p1504_p13, %p1498_p10 }
  0xb0   :  { %1508 = shalt.err (!%p1505_p0)  }
  0xb1   :  { %158 = dma.hbm_to_vmem [thread:$0]  %s145_s20, 16, %s156_s4, [#allocation3 + $0x3] }
  0xb2   :  { %s1712_s26 = smov [#allocation2 + $0x4]   ;;  %s1906_s2 = sld [smem:[#allocation4 + $0x5]] }
  0xb3   :  { %s171_s27 = sshll.u32 %s1712_s26, 4  ;;  %s1713_s11 = smov [#allocation2 + $0x5]   ;;  %s172_s27 = int_to_ptr.vmem [resolvable:$true] %s171_s27 }
  0xb4   :  { %s187_s6 = sshll.u32 %s1713_s11, 4  ;;  %s1908_s13 = sld [smem:[#allocation4 + $0x6]]  ;;  %s1911_s6 = int_to_ptr.vmem [resolvable:$true] %s187_s6 }
  0xb5   :  { %s1052_s14 = sshll.u32 %s1898_s22, 4 }
  0xb6   :  { %s161_s17 = scalar_lea.hbm %s2004_s1, %s1052_s14 }
  0xb7   :  { %s1509_s18 = scalar_lea.hbm %s161_s17, 16  ;;  %p1512_p2 = scmp.lt.u32.totalorder %s161_s17, %s2004_s1 }
  0xb8   :  { %p1510_p1 = scmp.ne.s32.totalorder %s161_s17, %s1509_s18  ;;  %p1513_p3 = scmp.lt.u32.totalorder %s1852_s15, %s1509_s18 }
  0xb9   :  { %p1515_p5 = scmp.lt.u32.totalorder %s1509_s18, %s161_s17 }
  0xba   :  { %p1514_p4 = por %p1513_p3, %p1512_p2 }
  0xbc   :  { %p1516_p6 = por %p1515_p5, %p1514_p4 }
  0xbe   :  { %p1517_p7 = pnand %p1516_p6, %p1510_p1 }
  0xc0   :  { %1520 = shalt.err (!%p1517_p7)  }
  0xc1   :  { %s1521_s19 = scalar_lea.vmem %s172_s27, 16  ;;  %p1526_p9 = scmp.lt.s32.totalorder %s172_s27, %s1835_s0 }
  0xc2   :  { %p1522_p8 = scmp.ne.s32.totalorder %s172_s27, %s1521_s19  ;;  %p1527_p10 = scmp.lt.s32.totalorder %s1861_s12, %s1521_s19 }
  0xc4   :  { %p1528_p11 = por %p1527_p10, %p1526_p9 }
  0xc6   :  { %p1529_p12 = pnand %p1528_p11, %p1522_p8 }
  0xc8   :  { %1532 = shalt.err (!%p1529_p12)  }
  0xc9   :  { %174 = dma.hbm_to_vmem [thread:$0]  %s161_s17, 16, %s172_s27, [#allocation3 + $0x4] }
  0xca   :  { %s1054_s20 = sshll.u32 %s1906_s2, 4  ;;  %s1714_s21 = smov [#allocation2 + $0x6]  }
  0xcb   :  { %s203_s4 = sshll.u32 %s1714_s21, 4  ;;  %s177_s24 = scalar_lea.hbm %s2004_s1, %s1054_s20  ;;  %s1926_s4 = int_to_ptr.vmem [resolvable:$true] %s203_s4 }
  0xcc   :  { %s1533_s25 = scalar_lea.hbm %s177_s24, 16  ;;  %p1536_p0 = scmp.lt.u32.totalorder %s177_s24, %s2004_s1 }
  0xcd   :  { %p1534_p13 = scmp.ne.s32.totalorder %s177_s24, %s1533_s25  ;;  %p1537_p1 = scmp.lt.u32.totalorder %s1852_s15, %s1533_s25 }
  0xce   :  { %p1539_p3 = scmp.lt.u32.totalorder %s1533_s25, %s177_s24 }
  0xcf   :  { %p1538_p2 = por %p1537_p1, %p1536_p0 }
  0xd1   :  { %p1540_p4 = por %p1539_p3, %p1538_p2 }
  0xd3   :  { %p1541_p5 = pnand %p1540_p4, %p1534_p13 }
  0xd5   :  { %1544 = shalt.err (!%p1541_p5)  }
  0xd6   :  { %s1545_s27 = scalar_lea.vmem %s1911_s6, 16  ;;  %p1550_p7 = scmp.lt.s32.totalorder %s1911_s6, %s1835_s0 }
  0xd7   :  { %p1546_p6 = scmp.ne.s32.totalorder %s1911_s6, %s1545_s27  ;;  %p1551_p8 = scmp.lt.s32.totalorder %s1861_s12, %s1545_s27 }
  0xd9   :  { %p1552_p9 = por %p1551_p8, %p1550_p7 }
  0xdb   :  { %p1553_p10 = pnand %p1552_p9, %p1546_p6 }
  0xdd   :  { %1556 = shalt.err (!%p1553_p10)  }
  0xde   :  { %190 = dma.hbm_to_vmem [thread:$0]  %s177_s24, 16, %s1911_s6, [#allocation3 + $0x5] }
  0xdf   :  { %s1056_s2 = sshll.u32 %s1908_s13, 4  ;;  %s1057_s11 = sld [smem:[#allocation4 + $0x7]] }
  0xe0   :  { %s193_s16 = scalar_lea.hbm %s2004_s1, %s1056_s2 }
  0xe1   :  { %s1557_s17 = scalar_lea.hbm %s193_s16, 16  ;;  %p1560_p12 = scmp.lt.u32.totalorder %s193_s16, %s2004_s1 }
  0xe2   :  { %p1558_p11 = scmp.ne.s32.totalorder %s193_s16, %s1557_s17  ;;  %p1561_p13 = scmp.lt.u32.totalorder %s1852_s15, %s1557_s17 }
  0xe3   :  { %p1563_p1 = scmp.lt.u32.totalorder %s1557_s17, %s193_s16 }
  0xe4   :  { %p1562_p0 = por %p1561_p13, %p1560_p12 }
  0xe6   :  { %p1564_p2 = por %p1563_p1, %p1562_p0 }
  0xe8   :  { %p1565_p3 = pnand %p1564_p2, %p1558_p11 }
  0xea   :  { %1568 = shalt.err (!%p1565_p3)  }
  0xeb   :  { %s1569_s6 = scalar_lea.vmem %s1926_s4, 16  ;;  %p1574_p5 = scmp.lt.s32.totalorder %s1926_s4, %s1835_s0 }
  0xec   :  { %p1570_p4 = scmp.ne.s32.totalorder %s1926_s4, %s1569_s6  ;;  %p1575_p6 = scmp.lt.s32.totalorder %s1861_s12, %s1569_s6 }
  0xee   :  { %p1576_p7 = por %p1575_p6, %p1574_p5 }
  0xf0   :  { %p1577_p8 = pnand %p1576_p7, %p1570_p4 }
  0xf2   :  { %1580 = shalt.err (!%p1577_p8)  }
  0xf3   :  { %206 = dma.hbm_to_vmem [thread:$0]  %s193_s16, 16, %s1926_s4, [#allocation3 + $0x6] }
  0xf4   :  { %s1715_s13 = smov [#allocation2 + $0x7]   ;;  %s1058_s19 = sshll.u32 %s1057_s11, 4 }
  0xf5   :  { %s219_s30 = sshll.u32 %s1715_s13, 4  ;;  %s209_s22 = scalar_lea.hbm %s2004_s1, %s1058_s19  ;;  %s220_s30 = int_to_ptr.vmem [resolvable:$true] %s219_s30 }
  0xf6   :  { %s1581_s23 = scalar_lea.hbm %s209_s22, 16  ;;  %p1584_p10 = scmp.lt.u32.totalorder %s209_s22, %s2004_s1 }
  0xf7   :  { %p1582_p9 = scmp.ne.s32.totalorder %s209_s22, %s1581_s23  ;;  %p1585_p11 = scmp.lt.u32.totalorder %s1852_s15, %s1581_s23 }
  0xf8   :  { %p1587_p13 = scmp.lt.u32.totalorder %s1581_s23, %s209_s22 }
  0xf9   :  { %p1586_p12 = por %p1585_p11, %p1584_p10 }
  0xfb   :  { %p1588_p0 = por %p1587_p13, %p1586_p12 }
  0xfd   :  { %p1589_p1 = pnand %p1588_p0, %p1582_p9 }
  0xff   :  { %1592 = shalt.err (!%p1589_p1)  }
 0x100   :  { %s1593_s4 = scalar_lea.vmem %s220_s30, 16  ;;  %p1598_p3 = scmp.lt.s32.totalorder %s220_s30, %s1835_s0 }
 0x101   :  { %p1594_p2 = scmp.ne.s32.totalorder %s220_s30, %s1593_s4  ;;  %p1599_p4 = scmp.lt.s32.totalorder %s1861_s12, %s1593_s4 }
 0x103   :  { %p1600_p5 = por %p1599_p4, %p1598_p3 }
 0x105   :  { %p1601_p6 = pnand %p1600_p5, %p1594_p2 }
 0x107   :  { %1604 = shalt.err (!%p1601_p6)  }
 0x108   :  { %222 = dma.hbm_to_vmem [thread:$0]  %s209_s22, 16, %s220_s30, [#allocation3 + $0x7] }
 0x109   :  { %1679 = dma.done.wait [#allocation3], 16 }
 0x10a   :  { %1680 = vsyncadd [#allocation3], 4294967280 }
 0x10b   :  { %1681 = dma.done.wait [#allocation3 + $0x1], 16 }
 0x10c   :  { %1682 = vsyncadd [#allocation3 + $0x1], 4294967280 }
 0x10d   :  { %1683 = dma.done.wait [#allocation3 + $0x2], 16 }
 0x10e   :  { %1684 = vsyncadd [#allocation3 + $0x2], 4294967280 }
 0x10f   :  { %1685 = dma.done.wait [#allocation3 + $0x3], 16 }
 0x110   :  { %1686 = vsyncadd [#allocation3 + $0x3], 4294967280 }
 0x111   :  { %1687 = dma.done.wait [#allocation3 + $0x4], 16 }
 0x112   :  { %1688 = vsyncadd [#allocation3 + $0x4], 4294967280 }
 0x113   :  { %1689 = dma.done.wait [#allocation3 + $0x5], 16 }
 0x114   :  { %1690 = vsyncadd [#allocation3 + $0x5], 4294967280 }
 0x115   :  { %1691 = dma.done.wait [#allocation3 + $0x6], 16 }
 0x116   :  { %1692 = vsyncadd [#allocation3 + $0x6], 4294967280 }
 0x117   :  { %1693 = dma.done.wait [#allocation3 + $0x7], 16 }
 0x118   :  { %1694 = vsyncadd [#allocation3 + $0x7], 4294967280  ;;  %v1171_v0 = vld [vmem:[#allocation11 + $0x4] ss:$16 sps:$4 sm:$0xff]   ;;  %v1173_v1 = vld [vmem:[#allocation11] ss:$16 sps:$4 sm:$0xff]  }
 0x119   :  { %652 = vmatprep.subr.bf16.mxu0 %v1171_v0  ;;  %v1174_v2 = vld [vmem:[#allocation11 + $0x24] ss:$16 sps:$4 sm:$0xff]   ;;  %v1176_v3 = vld [vmem:[#allocation11 + $0x20] ss:$16 sps:$4 sm:$0xff]   ;;  %v1182_v5 = vld [vmem:[#allocation11 + $0xc] ss:$16 sps:$4 sm:$0xff]  }
 0x11a   :  { %653 = vmatpush1.bf16.msra.mxu0 %v1173_v1  ;;  %v1177_v4 = vld [vmem:[#allocation11 + $0x44] ss:$16 sps:$4 sm:$0xff]   ;;  %v1185_v6 = vld [vmem:[#allocation11 + $0x8] ss:$16 sps:$4 sm:$0xff]   ;;  %v1179_v7 = vld [vmem:[#allocation11 + $0x40] ss:$16 sps:$4 sm:$0xff]   ;;  %693 = vmatprep.subr.bf16.mxu1 %v1182_v5 }
 0x11b   :  { %654 = vmatprep.subr.bf16.mxu0 %v1174_v2  ;;  %v1180_v8 = vld [vmem:[#allocation11 + $0x64] ss:$16 sps:$4 sm:$0xff]   ;;  %694 = vmatpush1.bf16.msra.mxu1 %v1185_v6  ;;  %v1188_v9 = vld [vmem:[#allocation11 + $0x2c] ss:$16 sps:$4 sm:$0xff]   ;;  %v1191_v10 = vld [vmem:[#allocation11 + $0x28] ss:$16 sps:$4 sm:$0xff]  }
 0x11c   :  { %695 = vmatprep.subr.bf16.mxu1 %v1188_v9  ;;  %v1184_v11 = vld [vmem:[#allocation11 + $0x60] ss:$16 sps:$4 sm:$0xff]   ;;  %v1186_v12 = vld [vmem:[#allocation11 + $0x84] ss:$16 sps:$4 sm:$0xff]   ;;  %v1194_v13 = vld [vmem:[#allocation11 + $0x4c] ss:$16 sps:$4 sm:$0xff]  }
 0x11d   :  { %v1197_v14 = vld [vmem:[#allocation11 + $0x48] ss:$16 sps:$4 sm:$0xff]   ;;  %v1200_v15 = vld [vmem:[#allocation11 + $0x6c] ss:$16 sps:$4 sm:$0xff]   ;;  %v1190_v16 = vld [vmem:[#allocation11 + $0x80] ss:$16 sps:$4 sm:$0xff]  }
 0x11e   :  { %655 = vmatpush1.bf16.msra.mxu0 %v1176_v3  ;;  %v1192_v17 = vld [vmem:[#allocation11 + $0xa4] ss:$16 sps:$4 sm:$0xff]   ;;  %v1203_v18 = vld [vmem:[#allocation11 + $0x68] ss:$16 sps:$4 sm:$0xff]   ;;  %v1206_v19 = vld [vmem:[#allocation11 + $0x8c] ss:$16 sps:$4 sm:$0xff]  }
 0x11f   :  { %656 = vmatprep.subr.bf16.mxu0 %v1177_v4  ;;  %696 = vmatpush1.bf16.msra.mxu1 %v1191_v10  ;;  %v1196_v20 = vld [vmem:[#allocation11 + $0xa0] ss:$16 sps:$4 sm:$0xff]   ;;  %v1198_v21 = vld [vmem:[#allocation11 + $0xc4] ss:$16 sps:$4 sm:$0xff]   ;;  %v1209_v22 = vld [vmem:[#allocation11 + $0x88] ss:$16 sps:$4 sm:$0xff]  }
 0x120   :  { %697 = vmatprep.subr.bf16.mxu1 %v1194_v13  ;;  %v1212_v23 = vld [vmem:[#allocation11 + $0xac] ss:$16 sps:$4 sm:$0xff]   ;;  %v1202_v24 = vld [vmem:[#allocation11 + $0xc0] ss:$16 sps:$4 sm:$0xff]   ;;  %v1204_v25 = vld [vmem:[#allocation11 + $0xe4] ss:$16 sps:$4 sm:$0xff]  }
 0x121   :  { %v1215_v26 = vld [vmem:[#allocation11 + $0xa8] ss:$16 sps:$4 sm:$0xff]   ;;  %v1218_v27 = vld [vmem:[#allocation11 + $0xcc] ss:$16 sps:$4 sm:$0xff]   ;;  %v1208_v28 = vld [vmem:[#allocation11 + $0xe0] ss:$16 sps:$4 sm:$0xff]  }
 0x122   :  { %657 = vmatpush1.bf16.msra.mxu0 %v1179_v7  ;;  %v1210_v29 = vld [vmem:[#allocation11 + $0x104] ss:$16 sps:$4 sm:$0xff]   ;;  %v1221_v30 = vld [vmem:[#allocation11 + $0xc8] ss:$16 sps:$4 sm:$0xff]   ;;  %v1224_v31 = vld [vmem:[#allocation11 + $0xec] ss:$16 sps:$4 sm:$0xff]  }
 0x123   :  { %658 = vmatprep.subr.bf16.mxu0 %v1180_v8  ;;  %698 = vmatpush1.bf16.msra.mxu1 %v1197_v14  ;;  %v1214_v32 = vld [vmem:[#allocation11 + $0x100] ss:$16 sps:$4 sm:$0xff]   ;;  %v1216_v33 = vld [vmem:[#allocation11 + $0x124] ss:$16 sps:$4 sm:$0xff]   ;;  %v1227_v34 = vld [vmem:[#allocation11 + $0xe8] ss:$16 sps:$4 sm:$0xff]  }
 0x124   :  { %699 = vmatprep.subr.bf16.mxu1 %v1200_v15  ;;  %v1230_v35 = vld [vmem:[#allocation11 + $0x10c] ss:$16 sps:$4 sm:$0xff]   ;;  %v1220_v36 = vld [vmem:[#allocation11 + $0x120] ss:$16 sps:$4 sm:$0xff]   ;;  %v1222_v37 = vld [vmem:[#allocation11 + $0x144] ss:$16 sps:$4 sm:$0xff]  }
 0x125   :  { %v1233_v38 = vld [vmem:[#allocation11 + $0x108] ss:$16 sps:$4 sm:$0xff]   ;;  %v1236_v39 = vld [vmem:[#allocation11 + $0x12c] ss:$16 sps:$4 sm:$0xff]   ;;  %v242_v40 = vld [vmem:[#allocation8] sm:$0xff] }
 0x126   :  { %659 = vmatpush1.bf16.msra.mxu0 %v1184_v11  ;;  %v1226_v41 = vld [vmem:[#allocation11 + $0x140] ss:$16 sps:$4 sm:$0xff]   ;;  %v245_v42 = vpack.c.bf16 %v242_v40, %v242_v40  ;;  %v1228_v43 = vld [vmem:[#allocation11 + $0x164] ss:$16 sps:$4 sm:$0xff]   ;;  %v1239_v44 = vld [vmem:[#allocation11 + $0x128] ss:$16 sps:$4 sm:$0xff]  }
 0x127   :  { %660 = vmatprep.subr.bf16.mxu0 %v1186_v12  ;;  %700 = vmatpush1.bf16.msra.mxu1 %v1203_v18  ;;  %v1232_v45 = vld [vmem:[#allocation11 + $0x160] ss:$16 sps:$4 sm:$0xff]   ;;  %v1242_v46 = vld [vmem:[#allocation11 + $0x14c] ss:$16 sps:$4 sm:$0xff]   ;;  %v1234_v47 = vld [vmem:[#allocation11 + $0x184] ss:$16 sps:$4 sm:$0xff]  }
 0x128   :  { %701 = vmatprep.subr.bf16.mxu1 %v1206_v19  ;;  %684 = vmatprep.mubr.bf16.mxu0 %v245_v42  ;;  %v1245_v48 = vld [vmem:[#allocation11 + $0x148] ss:$16 sps:$4 sm:$0xff]   ;;  %v1248_v49 = vld [vmem:[#allocation11 + $0x16c] ss:$16 sps:$4 sm:$0xff]   ;;  %v1238_v50 = vld [vmem:[#allocation11 + $0x180] ss:$16 sps:$4 sm:$0xff]  }
 0x129   :  { %725 = vmatprep.mubr.bf16.mxu1 %v245_v42  ;;  %v1240_v51 = vld [vmem:[#allocation11 + $0x1a4] ss:$16 sps:$4 sm:$0xff]   ;;  %v1251_v52 = vld [vmem:[#allocation11 + $0x168] ss:$16 sps:$4 sm:$0xff]   ;;  %v1254_v53 = vld [vmem:[#allocation11 + $0x18c] ss:$16 sps:$4 sm:$0xff]  }
 0x12a   :  { %661 = vmatpush1.bf16.msra.mxu0 %v1190_v16  ;;  %v1244_v54 = vld [vmem:[#allocation11 + $0x1a0] ss:$16 sps:$4 sm:$0xff]   ;;  %v1246_v55 = vld [vmem:[#allocation11 + $0x1c4] ss:$16 sps:$4 sm:$0xff]   ;;  %v1257_v56 = vld [vmem:[#allocation11 + $0x188] ss:$16 sps:$4 sm:$0xff]  }
 0x12b   :  { %662 = vmatprep.subr.bf16.mxu0 %v1192_v17  ;;  %702 = vmatpush1.bf16.msra.mxu1 %v1209_v22  ;;  %v1258_v57 = vld [vmem:[#allocation11 + $0x1ac] ss:$16 sps:$4 sm:$0xff]   ;;  %v1250_v58 = vld [vmem:[#allocation11 + $0x1c0] ss:$16 sps:$4 sm:$0xff]   ;;  %v1252_v60 = vld [vmem:[#allocation11 + $0x1e4] ss:$16 sps:$4 sm:$0xff]   ;;  %v312_v22 = vlaneseq }
 0x12c   :  { %703 = vmatprep.subr.bf16.mxu1 %v1212_v23  ;;  %v240_v59 = vld [vmem:[#allocation2] sm:$0xff]  ;;  %v1256_v0 = vld [vmem:[#allocation11 + $0x1e0] ss:$16 sps:$4 sm:$0xff]   ;;  %v1272_v7 = vld [vmem:[#allocation12 + $0x14] ss:$8 sps:$4 sm:$0xff]   ;;  %v1716_v18 = vmov 0  }
 0x12d   :  { %v1260_v61 = vld [vmem:[#allocation11 + $0x1a8] ss:$16 sps:$4 sm:$0xff]   ;;  %v1261_v62 = vld [vmem:[#allocation11 + $0x1cc] ss:$16 sps:$4 sm:$0xff]   ;;  %v241_v63 = vmax.f32 %v240_v59, 0.0  ;;  %v313_v23 = vshrl.u32 %v312_v22, 7 }
 0x12e   :  { %663 = vmatpush1.bf16.msra.mxu0 %v1196_v20  ;;  %v1263_v1 = vld [vmem:[#allocation11 + $0x1c8] ss:$16 sps:$4 sm:$0xff]   ;;  %v1264_v2 = vld [vmem:[#allocation11 + $0x1ec] ss:$16 sps:$4 sm:$0xff]  }
 0x12f   :  { %664 = vmatprep.subr.bf16.mxu0 %v1198_v21  ;;  %704 = vmatpush1.bf16.msra.mxu1 %v1215_v26  ;;  %v244_v3 = vpack.c.bf16 %v241_v63, %v241_v63  ;;  %v1266_v4 = vld [vmem:[#allocation11 + $0x1e8] ss:$16 sps:$4 sm:$0xff]   ;;  %v1269_v5 = vld [vmem:[#allocation12 + $0x4] ss:$8 sps:$4 sm:$0xff]   ;;  %v1278_v11 = vld [vmem:[#allocation12 + $0x34] ss:$8 sps:$4 sm:$0xff]  }
 0x130   :  { %705 = vmatprep.subr.bf16.mxu1 %v1218_v27  ;;  %v1267_v6 = vld [vmem:[#allocation12] ss:$8 sps:$4 sm:$0xff]   ;;  %v1270_v8 = vld [vmem:[#allocation12 + $0x10] ss:$8 sps:$4 sm:$0xff]   ;;  %v1275_v9 = vld [vmem:[#allocation12 + $0x24] ss:$8 sps:$4 sm:$0xff]  }
 0x131   :  { %v1273_v10 = vld [vmem:[#allocation12 + $0x20] ss:$8 sps:$4 sm:$0xff]   ;;  %v1276_v12 = vld [vmem:[#allocation12 + $0x30] ss:$8 sps:$4 sm:$0xff]   ;;  %v1281_v13 = vld [vmem:[#allocation12 + $0x44] ss:$8 sps:$4 sm:$0xff]  }
 0x132   :  { %665 = vmatpush1.bf16.msra.mxu0 %v1202_v24  ;;  %v1279_v14 = vld [vmem:[#allocation12 + $0x40] ss:$8 sps:$4 sm:$0xff]   ;;  %v1282_v15 = vld [vmem:[#allocation12 + $0x50] ss:$8 sps:$4 sm:$0xff]   ;;  %v1284_v16 = vld [vmem:[#allocation12 + $0x54] ss:$8 sps:$4 sm:$0xff]  }
 0x133   :  { %666 = vmatprep.subr.bf16.mxu0 %v1204_v25  ;;  %706 = vmatpush1.bf16.msra.mxu1 %v1221_v30  ;;  %v1287_v17 = vld [vmem:[#allocation12 + $0x64] ss:$8 sps:$4 sm:$0xff]   ;;  %v1285_v19 = vld [vmem:[#allocation12 + $0x60] ss:$8 sps:$4 sm:$0xff]   ;;  %v1290_v20 = vld [vmem:[#allocation12 + $0x74] ss:$8 sps:$4 sm:$0xff]  }
 0x134   :  { %707 = vmatprep.subr.bf16.mxu1 %v1224_v31  ;;  %v1288_v21 = vld [vmem:[#allocation12 + $0x70] ss:$8 sps:$4 sm:$0xff]   ;;  %v314_v24 = vsub.s32 0, %v313_v23  ;;  %v310_v25 = vld [vmem:[%s2008_s5] sm:$0xf]  ;;  %v318_v26 = vsub.s32 1, %v313_v23 }
 0x136   :  { %667 = vmatpush1.bf16.msra.mxu0 %v1208_v28  ;;  %v315_v27 = vrot.slane %v310_v25, %v314_v24  ;;  %v319_v28 = vrot.slane %v310_v25, %v318_v26 }
 0x137   :  { %668 = vmatprep.subr.bf16.mxu0 %v1210_v29  ;;  %708 = vmatpush1.bf16.msra.mxu1 %v1227_v34  ;;  %v326_v29 = vsub.s32 3, %v313_v23 }
 0x138   :  { %709 = vmatprep.subr.bf16.mxu1 %v1230_v35 }
 0x13a   :  { %669 = vmatpush1.bf16.msra.mxu0 %v1214_v32 }
 0x13b   :  { %670 = vmatprep.subr.bf16.mxu0 %v1216_v33  ;;  %710 = vmatpush1.bf16.msra.mxu1 %v1233_v38 }
 0x13c   :  { %711 = vmatprep.subr.bf16.mxu1 %v1236_v39  ;;  %v322_v39 = vsub.s32 2, %v313_v23 }
 0x13e   :  { %671 = vmatpush1.bf16.msra.mxu0 %v1220_v36 }
 0x13f   :  { %672 = vmatprep.subr.bf16.mxu0 %v1222_v37  ;;  %712 = vmatpush1.bf16.msra.mxu1 %v1239_v44  ;;  %v327_v37 = vrot.slane %v310_v25, %v326_v29  ;;  %v323_v44 = vrot.slane %v310_v25, %v322_v39 }
 0x140   :  { %713 = vmatprep.subr.bf16.mxu1 %v1242_v46 }
 0x142   :  { %673 = vmatpush1.bf16.msra.mxu0 %v1226_v41 }
 0x143   :  { %674 = vmatprep.subr.bf16.mxu0 %v1228_v43  ;;  %714 = vmatpush1.bf16.msra.mxu1 %v1245_v48 }
 0x144   :  { %715 = vmatprep.subr.bf16.mxu1 %v1248_v49 }
 0x146   :  { %675 = vmatpush1.bf16.msra.mxu0 %v1232_v45 }
 0x147   :  { %676 = vmatprep.subr.bf16.mxu0 %v1234_v47  ;;  %716 = vmatpush1.bf16.msra.mxu1 %v1251_v52 }
 0x148   :  { %717 = vmatprep.subr.bf16.mxu1 %v1254_v53 }
 0x14a   :  { %677 = vmatpush1.bf16.msra.mxu0 %v1238_v50 }
 0x14b   :  { %678 = vmatprep.subr.bf16.mxu0 %v1240_v51  ;;  %718 = vmatpush1.bf16.msra.mxu1 %v1257_v56 }
 0x14c   :  { %719 = vmatprep.subr.bf16.mxu1 %v1258_v57 }
 0x14e   :  { %679 = vmatpush1.bf16.msra.mxu0 %v1244_v54  ;;  %v243_v54 = vld [vmem:[#allocation9] sm:$0xff] }
 0x14f   :  { %680 = vmatprep.subr.bf16.mxu0 %v1246_v55  ;;  %720 = vmatpush1.bf16.msra.mxu1 %v1260_v61 }
 0x150   :  { %721 = vmatprep.subr.bf16.mxu1 %v1261_v62 }
 0x152   :  { %681 = vmatpush1.bf16.msra.mxu0 %v1250_v58 }
 0x153   :  { %682 = vmatprep.subr.bf16.mxu0 %v1252_v60  ;;  %722 = vmatpush1.bf16.msra.mxu1 %v1263_v1  ;;  %v777_v1 = vld [vmem:[%s2010_s7] sm:$0x3]  ;;  %s1717_s7 = smov [#allocation15]  }
 0x154   :  { %723 = vmatprep.subr.bf16.mxu1 %v1264_v2  ;;  %v782_v2 = vrot.slane %v777_v1, %v314_v24  ;;  %s944_s12 = sshll.u32 %s1717_s7, 4  ;;  %s945_s12 = int_to_ptr.vmem [resolvable:$true] %s944_s12 }
 0x155   :  { %s1605_s29 = scalar_lea.vmem %s945_s12, 128  ;;  %p1610_p8 = scmp.lt.s32.totalorder %s945_s12, %s945_s12 }
 0x156   :  { %683 = vmatpush1.bf16.msra.mxu0 %v1256_v0  ;;  %p1606_p7 = scmp.ne.s32.totalorder %s945_s12, %s1605_s29  ;;  %p1611_p9 = scmp.lt.s32.totalorder %s1605_s29, %s1605_s29 }
 0x157   :  { %724 = vmatpush1.bf16.msra.mxu1 %v1266_v4  ;;  %869 = vmatprep.subr.bf16.mxu0 %v1269_v5 }
 0x158   :  { %p1612_p10 = por %p1611_p9, %p1610_p8 }
 0x159   :  { %685 = vmatmul.mubr.bf16.vlgmr.msra.gmra.mrb[0].mxu0 %v244_v3 }
 0x15a   :  { %726 = vmatmul.mubr.bf16.vlgmr.msra.gmra.mrb[0].mxu1 %v244_v3  ;;  %870 = vmatpush1.bf16.msra.mxu0 %v1267_v6  ;;  %v786_v3 = vrot.slane %v777_v1, %v318_v26  ;;  %p1613_p11 = pnand %p1612_p10, %p1606_p7 }
 0x15b   :  { %871 = vmatprep.subr.bf16.mxu0 %v1272_v7  ;;  %901 = vmatprep.mubr.bf16.mxu0 %v1716_v18 }
 0x15e   :  { %872 = vmatpush1.bf16.msra.mxu0 %v1270_v8 }
 0x15f   :  { %873 = vmatprep.subr.bf16.mxu0 %v1275_v9 }
 0x162   :  { %874 = vmatpush1.bf16.msra.mxu0 %v1273_v10 }
 0x163   :  { %875 = vmatprep.subr.bf16.mxu0 %v1278_v11 }
 0x166   :  { %876 = vmatpush1.bf16.msra.mxu0 %v1276_v12 }
 0x167   :  { %877 = vmatprep.subr.bf16.mxu0 %v1281_v13 }
 0x16a   :  { %878 = vmatpush1.bf16.msra.mxu0 %v1279_v14 }
 0x16b   :  { %879 = vmatprep.subr.bf16.mxu0 %v1284_v16 }
 0x16e   :  { %880 = vmatpush1.bf16.msra.mxu0 %v1282_v15 }
 0x16f   :  { %881 = vmatprep.subr.bf16.mxu0 %v1287_v17 }
 0x172   :  { %882 = vmatpush1.bf16.msra.mxu0 %v1285_v19 }
 0x173   :  { %883 = vmatprep.subr.bf16.mxu0 %v1290_v20 }
 0x176   :  { %884 = vmatpush1.bf16.msra.mxu0 %v1288_v21 }
 0x22c   :  { %v686_v30 = vpop.f32.mrb[0].mxu0 }
 0x22d   :  { %v687_v31 = vadd.f32 %v686_v30, %v315_v27  ;;  %v688_v32 = vpop.f32.mrb[1].mxu0  ;;  %v727_v40 = vpop.f32.mrb[0].mxu1 }
 0x22e   :  { %v689_v33 = vadd.f32 %v688_v32, %v319_v28  ;;  %v690_v34 = vpop.f32.mrb[2].mxu0  ;;  %v729_v41 = vpop.f32.mrb[1].mxu1  ;;  %v728_v47 = vadd.f32 %v727_v40, %v323_v44 }
 0x22f   :  { %v1123_v35 = vmul.f32 -1.442695, %v687_v31  ;;  %v691_v36 = vpop.f32.mrb[3].mxu0  ;;  %v730_v42 = vadd.f32 %v729_v41, %v327_v37  ;;  %v731_v43 = vpop.f32.mrb[2].mxu1 }
 0x230   :  { %v1124_v38 = vmul.f32 -1.442695, %v689_v33  ;;  %v732_v45 = vpop.f32.mrb[3].mxu1 }
 0x231   :  { %1291 = vpow2.f32 %v1123_v35  ;;  %v1125_v46 = vmul.f32 -1.442695, %v730_v42 }
 0x232   :  { %1293 = vpow2.f32 %v1124_v38 }
 0x233   :  { %1295 = vpow2.f32 %v1125_v46 }
 0x234   :  { %1297 = vtanh.f32 %v728_v47 }
 0x23b   :  { %v1292_v48 = vpop.eup %1291 }
 0x23c   :  { %v1294_v49 = vpop.eup %1293  ;;  %v737_v50 = vadd.f32 1.0, %v1292_v48 }
 0x23d   :  { %v743_v51 = vadd.f32 1.0, %v1294_v49  ;;  %v1296_v52 = vpop.eup %1295 }
 0x23e   :  { %1299 = vrcp.f32 %v737_v50  ;;  %v1298_v53 = vpop.eup %1297  ;;  %v750_v56 = vadd.f32 1.0, %v1296_v52 }
 0x23f   :  { %1301 = vrcp.f32 %v743_v51 }
 0x240   :  { %1303 = vrcp.f32 %v750_v56 }
 0x248   :  { %v1300_v55 = vpop.eup %1299 }
 0x249   :  { %v1302_v57 = vpop.eup %1301  ;;  %v754_v58 = vmul.f32 %v1300_v55, %v1298_v53 }
 0x24a   :  { %v753_v59 = vmul.f32 %v1302_v57, %v243_v54  ;;  %v1304_v61 = vpop.eup %1303 }
 0x24c   :  { %v755_v60 = vadd.f32 %v754_v58, %v753_v59 }
 0x24e   :  { %1305 = vtanh.f32 %v755_v60  ;;  %759 = vst [vmem:[#allocation17] sm:$0xff] %v755_v60 }
 0x258   :  { %v1306_v62 = vpop.eup %1305 }
 0x259   :  { %v757_v63 = vmul.f32 %v1306_v62, %v1304_v61 }
 0x25b   :  { %v760_v0 = vpack.c.bf16 %v757_v63, %v757_v63  ;;  %758 = vst [vmem:[#allocation15] sm:$0xff] %v757_v63 }
 0x25d   :  { %902 = vmatmul.mubr.bf16.vlgmr.msra.gmra.mrb[4].mxu0 %v760_v0 }
 0x330   :  { %v903_v4 = vpop.f32.mrb[4].mxu0 }
 0x331   :  { %v904_v5 = vadd.f32 %v903_v4, %v782_v2  ;;  %v905_v6 = vpop.f32.mrb[5].mxu0 }
 0x332   :  { %v906_v7 = vadd.f32 %v905_v6, %v786_v3  ;;  %v907_v8 = vpop.f32.mrb[6].mxu0 }
 0x333   :  { %v908_v9 = vpop.f32.mrb[7].mxu0 }
 0x334   :  { %v910_v10 = vmax.f32 %v904_v5, %v906_v7 }
 0x336   :  { %911 = vmax.xlane.f32.xlu0 %v910_v10 }
 0x3c3   :  { %v912_v11 = vpop.xlane.xlu0 %911 }
 0x3c4   :  { %v913_v12 = vsub.f32 %v904_v5, %v912_v11  ;;  %v914_v13 = vsub.f32 %v906_v7, %v912_v11 }
 0x3c6   :  { %v915_v14 = vmul.f32 1.442695, %v913_v12  ;;  %v917_v15 = vmul.f32 1.442695, %v914_v13 }
 0x3c8   :  { %1307 = vpow2.f32 %v915_v14 }
 0x3c9   :  { %1309 = vpow2.f32 %v917_v15 }
 0x3d2   :  { %v1308_v16 = vpop.eup %1307 }
 0x3d3   :  { %v1310_v17 = vpop.eup %1309 }
 0x3d4   :  { %v919_v18 = vadd.f32 %v1310_v17, %v1308_v16 }
 0x3d6   :  { %920 = vadd.xlane.f32.xlu0 %v919_v18 }
 0x3d7   :  { %1616 = shalt.err (!%p1613_p11)
}
 0x3d8   :  { %s1617_s2 = scalar_lea.hbm %s2012_s9, 128 }
 0x3d9   :  { %p1618_p12 = scmp.ne.s32.totalorder %s2012_s9, %s1617_s2  ;;  %p1621_p13 = scmp.lt.u32.totalorder %s1617_s2, %s2012_s9 }
 0x3db   :  { %p1623_p0 = pnand %p1621_p13, %p1618_p12 }
 0x3dd   :  { %1626 = shalt.err (!%p1623_p0)
}
 0x3de   :  { %947 = dma.vmem_to_hbm [thread:$0]  %s945_s12, 128, %s2012_s9, [#allocation16]  }
 0x3df   :  { %s1718_s28 = smov [#allocation17]  }
 0x3e0   :  { %s954_s6 = sshll.u32 %s1718_s28, 4  ;;  %s955_s6 = int_to_ptr.vmem [resolvable:$true] %s954_s6 }
 0x3e1   :  { %s1627_s13 = scalar_lea.vmem %s955_s6, 128  ;;  %p1632_p2 = scmp.lt.s32.totalorder %s955_s6, %s955_s6 }
 0x3e2   :  { %p1628_p1 = scmp.ne.s32.totalorder %s955_s6, %s1627_s13  ;;  %p1633_p3 = scmp.lt.s32.totalorder %s1627_s13, %s1627_s13 }
 0x3e4   :  { %p1634_p4 = por %p1633_p3, %p1632_p2 }
 0x3e6   :  { %p1635_p5 = pnand %p1634_p4, %p1628_p1 }
 0x3e8   :  { %1638 = shalt.err (!%p1635_p5)
}
 0x3e9   :  { %s1639_s20 = scalar_lea.hbm %s2013_s10, 128 }
 0x3ea   :  { %p1640_p6 = scmp.ne.s32.totalorder %s2013_s10, %s1639_s20  ;;  %p1643_p7 = scmp.lt.u32.totalorder %s1639_s20, %s2013_s10 }
 0x3ec   :  { %p1645_p8 = pnand %p1643_p7, %p1640_p6 }
 0x3ee   :  { %1648 = shalt.err (!%p1645_p8)
}
 0x3ef   :  { %957 = dma.vmem_to_hbm [thread:$0]  %s955_s6, 128, %s2013_s10, [#allocation16]  }
 0x3f0   :  { %s1719_s4 = smov [#allocation14]  }
 0x3f1   :  { %s934_s1 = sshll.u32 %s1719_s4, 4  ;;  %s935_s1 = int_to_ptr.vmem [resolvable:$true] %s934_s1 }
 0x3f2   :  { %s1649_s0 = scalar_lea.vmem %s935_s1, 256  ;;  %p1654_p10 = scmp.lt.s32.totalorder %s935_s1, %s935_s1 }
 0x3f3   :  { %p1650_p9 = scmp.ne.s32.totalorder %s935_s1, %s1649_s0  ;;  %p1655_p11 = scmp.lt.s32.totalorder %s1649_s0, %s1649_s0 }
 0x3f5   :  { %p1656_p12 = por %p1655_p11, %p1654_p10 }
 0x3f7   :  { %p1657_p13 = pnand %p1656_p12, %p1650_p9 }
 0x463   :  { %v921_v19 = vpop.xlane.xlu0 %920 }
 0x464   :  { %1311 = vlog2.f32 %v921_v19 }
 0x46e   :  { %v1312_v20 = vpop.eup %1311 }
 0x46f   :  { %v923_v21 = vmul.f32 0.6931472, %v1312_v20 }
 0x471   :  { %v924_v22 = vsub.f32 %v913_v12, %v923_v21  ;;  %v925_v23 = vsub.f32 %v914_v13, %v923_v21 }
 0x473   :  { %926 = vst [vmem:[#allocation14] sm:$0xff] %v924_v22  ;;  %927 = vst [vmem:[#allocation14 + $0x8] sm:$0xff] %v925_v23 }
 0x474   :  { %1660 = shalt.err (!%p1657_p13)
}
 0x475   :  { %s1661_s15 = scalar_lea.hbm %s2011_s8, 256 }
 0x476   :  { %p1662_p0 = scmp.ne.s32.totalorder %s2011_s8, %s1661_s15  ;;  %p1665_p1 = scmp.lt.u32.totalorder %s1661_s15, %s2011_s8 }
 0x478   :  { %p1667_p2 = pnand %p1665_p1, %p1662_p0 }
 0x47a   :  { %1670 = shalt.err (!%p1667_p2)
}
 0x47b   :  { %937 = dma.vmem_to_hbm [thread:$0]  %s935_s1, 256, %s2011_s8, [#allocation6]  }
 0x47c   :  { %1695 = dma.done.wait [#allocation6], 256  }
 0x47d   :  { %1696 = vsyncadd [#allocation6], 4294967040 }
 0x47e   :  { %1697 = dma.done.wait [#allocation16], 256  }
 0x47f   :  { %1698 = vsyncadd [#allocation16], 4294967040 }
 0x480   :  { %967 = vsyncpa [#allocation5], 1 }
 0x481   :  { %968 = vsyncpa [#allocation10], 1 }
 0x482   :  { %969 = vsyncpa [#allocation13], 1 }
 0x483   :  { %970 = vsyncpa [#allocation6], 1 }
 0x484   :  { %971 = vsyncpa [#allocation16], 1 }
 0x485   :  { %972 = vsyncpa [#allocation7], 1 }
 0x486   :  { %973 = vsyncmov [#allocation3] }
 0x489   :  { %s974_s11 = vpop.sfrf %973 }
 0x48a   :  { %p1142_p3 = scmp.ne.s32.totalorder %s974_s11, 0 }
 0x48c   :  { %978 = shalt.err (%p1142_p3)  }
 0x48d   :  { %980 = vsyncmov [#allocation3 + $0x1] }
 0x490   :  { %s981_s14 = vpop.sfrf %980 }
 0x491   :  { %p1143_p4 = scmp.ne.s32.totalorder %s981_s14, 0 }
 0x493   :  { %985 = shalt.err (%p1143_p4)  }
 0x494   :  { %987 = vsyncmov [#allocation3 + $0x2] }
 0x497   :  { %s988_s8 = vpop.sfrf %987 }
 0x498   :  { %p1144_p5 = scmp.ne.s32.totalorder %s988_s8, 0 }
 0x49a   :  { %992 = shalt.err (%p1144_p5)  }
 0x49b   :  { %994 = vsyncmov [#allocation3 + $0x3] }
 0x49e   :  { %s995_s3 = vpop.sfrf %994 }
 0x49f   :  { %p1145_p6 = scmp.ne.s32.totalorder %s995_s3, 0 }
 0x4a1   :  { %999 = shalt.err (%p1145_p6)  }
 0x4a2   :  { %1001 = vsyncmov [#allocation3 + $0x4] }
 0x4a5   :  { %s1002_s16 = vpop.sfrf %1001 }
 0x4a6   :  { %p1146_p7 = scmp.ne.s32.totalorder %s1002_s16, 0 }
 0x4a8   :  { %1006 = shalt.err (%p1146_p7)  }
 0x4a9   :  { %1008 = vsyncmov [#allocation3 + $0x5] }
 0x4ac   :  { %s1009_s17 = vpop.sfrf %1008 }
 0x4ad   :  { %p1147_p8 = scmp.ne.s32.totalorder %s1009_s17, 0 }
 0x4af   :  { %1013 = shalt.err (%p1147_p8)  }
 0x4b0   :  { %1015 = vsyncmov [#allocation3 + $0x6] }
 0x4b3   :  { %s1016_s18 = vpop.sfrf %1015 }
 0x4b4   :  { %p1148_p9 = scmp.ne.s32.totalorder %s1016_s18, 0 }
 0x4b6   :  { %1020 = shalt.err (%p1148_p9)  }
 0x4b7   :  { %1022 = vsyncmov [#allocation3 + $0x7] }
 0x4ba   :  { %s1023_s28 = vpop.sfrf %1022 }
 0x4bb   :  { %p1149_p10 = scmp.ne.s32.totalorder %s1023_s28, 0 }
 0x4bd   :  { %1027 = shalt.err (%p1149_p10)  }

</bundles_post_ra>
